<compile_context>
chip_gen: v7x
topology: tpu7x:2x2x1
jax: 0.10.0
libtpu: 0.0.40
codegen_flags: <defaults>
</compile_context>

<pallas_src>
import numpy as np
import jax
import jax.numpy as jnp
from jax.experimental import pallas as pl
from jax.experimental.pallas import tpu as pltpu


# ----------------------------------------------------------------------------
# Small dense operators, built once in numpy (glue, not hot path)
# ----------------------------------------------------------------------------
def _pool_matrix(n: int) -> np.ndarray:
    """AdaptiveAvgPool1d(n -> n/2) over the last dim as an (n, n/2) matrix."""
    m = np.zeros((n, n // 2), dtype=np.float32)
    for j in range(n // 2):
        m[2 * j, j] = 0.5
        m[2 * j + 1, j] = 0.5
    return m


def _upsample_matrix(in_size: int, out_size: int) -> np.ndarray:
    """1-D linear interpolation matrix (in_size, out_size), align_corners=True."""
    m = np.zeros((in_size, out_size), dtype=np.float32)
    if in_size == 1:
        m[0, :] = 1.0
        return m
    scale = (in_size - 1) / (out_size - 1)
    for j in range(out_size):
        src = j * scale
        i0 = min(int(np.floor(src)), in_size - 2)
        frac = src - i0
        m[i0, j] += 1.0 - frac
        m[i0 + 1, j] += frac
    return m


def _band_masks(n: int):
    """0/1 masks B_k (n,n) with B_k[j+k-1, j] = 1, k in {0,1,2} (dx taps)."""
    masks = []
    for k in range(3):
        b = np.zeros((n, n), dtype=np.float32)
        for j in range(n):
            a = j + k - 1
            if 0 <= a < n:
                b[a, j] = 1.0
        masks.append(b)
    return masks


# ----------------------------------------------------------------------------
# Device-aware batch-block sizing
# ----------------------------------------------------------------------------
def _device_block_budget():
    """Returns (max block edge in elements, keep >= 2 grid steps?)."""
    try:
        kind = jax.devices()[0].device_kind.lower()
    except Exception:
        return 128, False
    if "v7" in kind or "7x" in kind:
        return 256, True            # 256x256 MXU, 2 TensorCores / chip
    if "v6" in kind:
        return 256, False           # 256x256 MXU, 1 TensorCore
    return 128, False               # v5e and older: 128x128 MXUs


def _pick_blocks(batch: int, n: int, max_dim: int, want_two_steps: bool):
    per = max(1, max_dim // n)                    # images per block edge
    br = bc = per
    # Shrink (rows first) only while the block would pad the batch by >= 2x;
    # otherwise keep the block big so the grid (a serial loop per core) stays
    # as short as possible.
    while br * bc > 1 and br * bc >= 2 * max(1, batch):
        if br > 1:
            br //= 2
        else:
            bc //= 2
    # v7x: both TensorCores need work -> keep the parallel grid >= 2 steps.
    if want_two_steps and batch > 1 and -(-batch // (br * bc)) < 2:
        if br > 1:
            br //= 2
        elif bc > 1:
            bc //= 2

    def _legal(br_, bc_):
        steps = -(-batch // (br_ * bc_))
        return steps == 1 or ((br_ * n) % 8 == 0 and (bc_ * n) % 128 == 0)

    if not _legal(br, bc):
        # Fall back to one grid step covering the whole padded batch
        # (block shape == full array shape is always a legal BlockSpec).
        # TODO(synk): for very large batches with n not dividing 128 this makes
        #   one tall block; tile the row axis manually in that case.
        bc = min(per, max(1, batch))
        br = -(-batch // bc)
    return br, bc


# ----------------------------------------------------------------------------
# Pallas kernel: one batch block (block_r x block_c images) per grid step
# ----------------------------------------------------------------------------
def _autoencoder1d_kernel(
    cb_ref,     # SMEM (1,)           conv1 bias (scalar)
    x_ref,      # VMEM (Rr, Lc)       input block, images tiled (row, lane), f32
    mtop_ref,   # VMEM (Rr, 1)        0 on each image's first row, else 1
    mbot_ref,   # VMEM (Rr, 1)        0 on each image's last row, else 1
    cstk_ref,   # VMEM (3*Lc, Lc)     stacked block-diag banded conv [C0;C1;C2], bf16
    r_ref,      # VMEM (Lc, Lc)       block-diag fused P.W1^T.Uw.W2^T, bf16
    uh_ref,     # VMEM (2*Rr, Rr)     block-diag bilinear row-upsample, bf16
    w3_ref,     # VMEM (Lc, Lc)       block-diag W3^T, bf16
    bp_ref,     # VMEM (1, Lc)        fused bias  b1.Uw.W2^T + b2 (tiled), f32
    b3_ref,     # VMEM (1, Lc)        b3 (tiled), f32
    out_ref,    # VMEM (2*Rr, Lc)     f32
):
    f32, bf16 = jnp.float32, jnp.bfloat16
    x = x_ref[...]                                 # (Rr, Lc) f32
    rr = x.shape[0]

    # dy = 0 tap needs row i-1, dy = 2 tap needs row i+1.  The XLU roll wraps
    # within the block, so 0/1 masks zero the rows leaked across image edges
    # (reproducing the 'same' zero padding).  Positive shifts only.
    xm = pltpu.roll(x, shift=1, axis=0) * mtop_ref[...]        # row i <- x[i-1]
    xp = pltpu.roll(x, shift=rr - 1, axis=0) * mbot_ref[...]   # row i <- x[i+1]

    # conv1 (3x3 'same') as ONE wide-K MXU matmul: [xm | x | xp] @ [C0; C1; C2]
    xcat = jnp.concatenate([xm, x, xp], axis=1).astype(bf16)   # (Rr, 3*Lc)
    conv = jnp.dot(xcat, cstk_ref[...], preferred_element_type=f32) + cb_ref[0]
    g = jnp.maximum(conv, 0.0).astype(bf16)                    # relu(conv1)
    # (relu after the pool is a numeric no-op -> folded into R, see builder)

    # pool -> linear1 -> col-upsample -> linear2, fused into one right-mult R
    t = jnp.dot(g, r_ref[...], preferred_element_type=f32).astype(bf16)
    # bilinear row-upsample (n -> 2n per image) + fused bias, then relu
    u = jnp.dot(uh_ref[...], t, preferred_element_type=f32) + bp_ref[...]
    u = jnp.maximum(u, 0.0).astype(bf16)

    # linear3 + sigmoid (EUP exp + EUP approx reciprocal)
    v = jnp.dot(u, w3_ref[...], preferred_element_type=f32) + b3_ref[...]
    out_ref[...] = pl.reciprocal(1.0 + jnp.exp(-v), approx=True)


# ----------------------------------------------------------------------------
# One-time builder: precompute operator matrices, return a jitted forward
# ----------------------------------------------------------------------------
def build_autoencoder1d(params: dict, n: int, batch: int):
    """Precompute all kernel operands for (params, n, batch) and return a
    jitted forward mapping (batch, n, n) -> (batch, 2n, n)."""
    assert n % 2 == 0, "Autoencoder1D requires even n"
    f32, bf16 = jnp.float32, jnp.bfloat16
    n_half = n // 2

    max_dim, want_two = _device_block_budget()
    block_r, block_c = _pick_blocks(batch, n, max_dim, want_two)
    block_b = block_r * block_c
    n_steps = -(-batch // block_b)
    b_pad = n_steps * block_b
    rr, lc = block_r * n, block_c * n

    # ---- per-image operator matrices (numpy, f32) ---------------------------
    P = _pool_matrix(n)                               # (n, n/2)
    Uw = _upsample_matrix(n_half, n)                  # (n/2, n)   right-mult
    Uh = _upsample_matrix(n, 2 * n).T                 # (2n, n)    left-mult
    w33 = np.asarray(params["conv_w"], np.float32).reshape(3, 3)
    bands = _band_masks(n)                            # dx taps as banded masks
    C = [bands[0] * w33[dy, 0] + bands[1] * w33[dy, 1] + bands[2] * w33[dy, 2]
         for dy in range(3)]
    W1t = np.asarray(params["w1"], np.float32).T
    W2t = np.asarray(params["w2"], np.float32).T
    W3t = np.asarray(params["w3"], np.float32).T
    R = P @ W1t @ Uw @ W2t                            # fused right-mult, f32
    b_fused = (np.asarray(params["b1"], np.float32) @ Uw @ W2t
               + np.asarray(params["b2"], np.float32))

    # ---- block-diagonal expansion + bf16 cast of MXU operands ---------------
    eye_c = np.eye(block_c, dtype=np.float32)
    eye_r = np.eye(block_r, dtype=np.float32)
    bd_c = lambda m: np.kron(eye_c, m)
    bd_r = lambda m: np.kron(eye_r, m)

    cstk = jnp.asarray(np.concatenate([bd_c(C[0]), bd_c(C[1]), bd_c(C[2])],
                                      axis=0), dtype=bf16)     # (3*Lc, Lc)
    r_bd = jnp.asarray(bd_c(R), dtype=bf16)                    # (Lc, Lc)
    uh_bd = jnp.asarray(bd_r(Uh), dtype=bf16)                  # (2*Rr, Rr)
    w3_bd = jnp.asarray(bd_c(W3t), dtype=bf16)                 # (Lc, Lc)
    bp = jnp.asarray(np.tile(b_fused, block_c).reshape(1, lc), dtype=f32)
    b3 = jnp.asarray(np.tile(np.asarray(params["b3"], np.float32),
                             block_c).reshape(1, lc), dtype=f32)
    cb = jnp.asarray(np.asarray(params["conv_b"], np.float32).reshape(1),
                     dtype=f32)

    rows = np.arange(rr)
    mtop = jnp.asarray(((rows % n) != 0).astype(np.float32).reshape(rr, 1), f32)
    mbot = jnp.asarray(((rows % n) != (n - 1)).astype(np.float32).reshape(rr, 1), f32)

    # ---- pallas_call (built once) --------------------------------------------
    inv = lambda shape: pl.BlockSpec(shape, lambda g: (0, 0))  # grid-invariant
    call = pl.pallas_call(
        _autoencoder1d_kernel,
        out_shape=jax.ShapeDtypeStruct((n_steps * 2 * rr, lc), f32),
        grid=(n_steps,),
        in_specs=[
            pl.BlockSpec(memory_space=pltpu.MemorySpace.SMEM),   # conv bias
            pl.BlockSpec((rr, lc), lambda g: (g, 0)),            # input block
            inv((rr, 1)), inv((rr, 1)),                          # boundary masks
            inv((3 * lc, lc)),                                   # stacked conv
            inv((lc, lc)),                                       # fused R
            inv((2 * rr, rr)),                                   # Uh
            inv((lc, lc)),                                       # W3^T
            inv((1, lc)), inv((1, lc)),                          # fused bias, b3
        ],
        out_specs=pl.BlockSpec((2 * rr, lc), lambda g: (g, 0)),
        compiler_params=pltpu.CompilerParams(
            dimension_semantics=("parallel",),
            vmem_limit_bytes=16 * 1024 * 1024,   # footprint is only a few MiB
        ),
    )

    def forward(x):
        xb = x.astype(f32)
        if b_pad != batch:
            xb = jnp.pad(xb, ((0, b_pad - batch), (0, 0), (0, 0)))
        # Pack (B, n, n) -> (n_steps*Rr, Lc); image (p, q) of a step sits at
        # rows p*n..p*n+n-1, cols q*n..q*n+n-1.
        xp = (xb.reshape(n_steps, block_r, block_c, n, n)
                .transpose(0, 1, 3, 2, 4)
                .reshape(n_steps * rr, lc))
        out = call(cb, xp, mtop, mbot, cstk, r_bd, uh_bd, w3_bd, bp, b3)
        out = (out.reshape(n_steps, block_r, 2 * n, block_c, n)
                  .transpose(0, 1, 3, 2, 4)
                  .reshape(b_pad, 2 * n, n))
        return out[:batch]

    return jax.jit(forward)


# ----------------------------------------------------------------------------
# Pure-JAX reference (mirrors the PyTorch forward) for a sanity check
# ----------------------------------------------------------------------------
def reference_forward(x: jnp.ndarray, params: dict, n: int) -> jnp.ndarray:
    n_half = n // 2
    B = x.shape[0]
    y = x[:, None, :, :]                                         # stack -> (B,1,n,n)
    y = jax.lax.conv_general_dilated(
        y, params["conv_w"], window_strides=(1, 1), padding="SAME",
        dimension_numbers=("NCHW", "OIHW", "NCHW"))
    y = y + params["conv_b"][None, :, None, None]
    y = jax.nn.relu(y)
    y = y.reshape(B, 1, n, n_half, 2).mean(-1)                   # adaptive avg pool
    y = jax.nn.relu(y)
    y = y @ params["w1"].T + params["b1"]
    Uh = jnp.asarray(_upsample_matrix(n, 2 * n))                 # (n, 2n)
    Uw = jnp.asarray(_upsample_matrix(n_half, n))                # (n/2, n)
    y = jnp.einsum("bchw,hH->bcHw", y, Uh)
    y = jnp.einsum("bcHw,wW->bcHW", y, Uw)
    y = y @ params["w2"].T + params["b2"]
    y = jax.nn.relu(y)
    y = y @ params["w3"].T + params["b3"]
    y = jax.nn.sigmoid(y)
    return jnp.squeeze(y)


def init_params(key, n: int) -> dict:
    """Deterministic parameter init matching the nn.Module shapes."""
    n_half = n // 2
    ks = jax.random.split(key, 8)

    def u(k, shape, fan_in):
        bound = 1.0 / np.sqrt(fan_in)
        return jax.random.uniform(k, shape, jnp.float32, -bound, bound)

    return dict(
        conv_w=u(ks[0], (1, 1, 3, 3), 9),        # Conv2d(1, 1, 3)
        conv_b=u(ks[1], (1,), 9),
        w1=u(ks[2], (n_half, n_half), n_half),   # Linear(n/2, n/2)
        b1=u(ks[3], (n_half,), n_half),
        w2=u(ks[4], (n, n), n),                  # Linear(n, n)
        b2=u(ks[5], (n,), n),
        w3=u(ks[6], (n, n), n),                  # Linear(n, n)
        b3=u(ks[7], (n,), n),
    )


if __name__ == "__main__":
    n = 16
    B = 64
    key = jax.random.PRNGKey(0)
    kx, kp = jax.random.split(key)
    x = jax.random.uniform(kx, (B, n, n), jnp.float32)
    params = init_params(kp, n)

    forward = build_autoencoder1d(params, n, B)      # one-time glue + jit
    out = jax.block_until_ready(forward(x))

    ref = reference_forward(x, params, n)
    assert out.shape == (B, 2 * n, n), out.shape
    err = float(jnp.max(jnp.abs(out - ref)))
    # bf16 MXU operands vs. an all-f32 reference: typical max deviation on the
    # (0,1) sigmoid output is ~1e-3; allow generous margin.
    assert err < 5e-2, err

    print("KERNEL_OK")
</pallas_src>

<mosaic_0001>
module attributes {stable_mosaic.version = 11 : i64} {
  func.func @_autoencoder1d_kernel(%arg0: i32, %arg1: memref<1xf32, #tpu.memory_space<smem>>, %arg2: memref<128x128xf32, #tpu.memory_space<vmem>>, %arg3: memref<128x1xf32, #tpu.memory_space<vmem>>, %arg4: memref<128x1xf32, #tpu.memory_space<vmem>>, %arg5: memref<384x128xbf16, #tpu.memory_space<vmem>>, %arg6: memref<128x128xbf16, #tpu.memory_space<vmem>>, %arg7: memref<256x128xbf16, #tpu.memory_space<vmem>>, %arg8: memref<128x128xbf16, #tpu.memory_space<vmem>>, %arg9: memref<1x128xf32, #tpu.memory_space<vmem>>, %arg10: memref<1x128xf32, #tpu.memory_space<vmem>>, %arg11: memref<256x128xf32, #tpu.memory_space<vmem>>) attributes {dimension_semantics = [#tpu.dimension_semantics<parallel>], iteration_bounds = array<i64: 1>, scalar_prefetch = 0 : i64, scratch_operands = 0 : i64, tpu.core_type = #tpu.core_type<tc>, window_params = [{transform_indices = @transform_0, window_bounds = array<i64: 1>}, {transform_indices = @transform_1, window_bounds = array<i64: 128, 128>}, {pipeline_mode = #tpu.pipeline_mode<synchronous>, transform_indices = @transform_2, window_bounds = array<i64: 128, 1>}, {pipeline_mode = #tpu.pipeline_mode<synchronous>, transform_indices = @transform_3, window_bounds = array<i64: 128, 1>}, {pipeline_mode = #tpu.pipeline_mode<synchronous>, transform_indices = @transform_4, window_bounds = array<i64: 384, 128>}, {pipeline_mode = #tpu.pipeline_mode<synchronous>, transform_indices = @transform_5, window_bounds = array<i64: 128, 128>}, {pipeline_mode = #tpu.pipeline_mode<synchronous>, transform_indices = @transform_6, window_bounds = array<i64: 256, 128>}, {pipeline_mode = #tpu.pipeline_mode<synchronous>, transform_indices = @transform_7, window_bounds = array<i64: 128, 128>}, {pipeline_mode = #tpu.pipeline_mode<synchronous>, transform_indices = @transform_8, window_bounds = array<i64: 1, 128>}, {pipeline_mode = #tpu.pipeline_mode<synchronous>, transform_indices = @transform_9, window_bounds = array<i64: 1, 128>}, {transform_indices = @transform_10, window_bounds = array<i64: 256, 128>}]} {
    %c0 = arith.constant 0 : index
    %c0_0 = arith.constant 0 : index
    %0 = vector.load %arg2[%c0, %c0_0] : memref<128x128xf32, #tpu.memory_space<vmem>>, vector<128x128xf32>
    %c1_i32 = arith.constant 1 : i32
    %1 = tpu.dynamic_rotate %0 by %c1_i32 dim 0 : vector<128x128xf32>, i32 -> vector<128x128xf32>
    %c0_1 = arith.constant 0 : index
    %c0_2 = arith.constant 0 : index
    %2 = vector.load %arg3[%c0_1, %c0_2] : memref<128x1xf32, #tpu.memory_space<vmem>>, vector<128x1xf32>
    %3 = vector.broadcast %2 : vector<128x1xf32> to vector<128x128xf32>
    %4 = arith.mulf %1, %3 : vector<128x128xf32>
    %c127_i32 = arith.constant 127 : i32
    %5 = tpu.dynamic_rotate %0 by %c127_i32 dim 0 : vector<128x128xf32>, i32 -> vector<128x128xf32>
    %c0_3 = arith.constant 0 : index
    %c0_4 = arith.constant 0 : index
    %6 = vector.load %arg4[%c0_3, %c0_4] : memref<128x1xf32, #tpu.memory_space<vmem>>, vector<128x1xf32>
    %7 = vector.broadcast %6 : vector<128x1xf32> to vector<128x128xf32>
    %8 = arith.mulf %5, %7 : vector<128x128xf32>
    %9 = tpu.concatenate %4, %0, %8 in 1 : vector<128x128xf32>, vector<128x128xf32>, vector<128x128xf32> -> vector<128x384xf32>
    %10 = arith.truncf %9 : vector<128x384xf32> to vector<128x384xbf16>
    %c0_5 = arith.constant 0 : index
    %c0_6 = arith.constant 0 : index
    %11 = vector.load %arg5[%c0_5, %c0_6] : memref<384x128xbf16, #tpu.memory_space<vmem>>, vector<384x128xbf16>
    %cst = arith.constant dense<0.000000e+00> : vector<128x128xf32>
    %12 = tpu.matmul %10, %11, %cst {dimension_numbers = #tpu.dot_dimension_numbers<[1], [0], [0], [1], [0, 0, 1, 1], [], []>} : vector<128x384xbf16>, vector<384x128xbf16>, vector<128x128xf32> -> vector<128x128xf32>
    %c0_7 = arith.constant 0 : index
    %13 = memref.load %arg1[%c0_7] : memref<1xf32, #tpu.memory_space<smem>>
    %14 = vector.broadcast %13 : f32 to vector<128x128xf32>
    %15 = arith.addf %12, %14 : vector<128x128xf32>
    %cst_8 = arith.constant 0.000000e+00 : f32
    %16 = vector.broadcast %cst_8 : f32 to vector<128x128xf32>
    %17 = arith.maximumf %15, %16 : vector<128x128xf32>
    %18 = arith.truncf %17 : vector<128x128xf32> to vector<128x128xbf16>
    %c0_9 = arith.constant 0 : index
    %c0_10 = arith.constant 0 : index
    %19 = vector.load %arg6[%c0_9, %c0_10] : memref<128x128xbf16, #tpu.memory_space<vmem>>, vector<128x128xbf16>
    %cst_11 = arith.constant dense<0.000000e+00> : vector<128x128xf32>
    %20 = tpu.matmul %18, %19, %cst_11 {dimension_numbers = #tpu.dot_dimension_numbers<[1], [0], [0], [1], [0, 0, 1, 1], [], []>} : vector<128x128xbf16>, vector<128x128xbf16>, vector<128x128xf32> -> vector<128x128xf32>
    %21 = arith.truncf %20 : vector<128x128xf32> to vector<128x128xbf16>
    %c0_12 = arith.constant 0 : index
    %c0_13 = arith.constant 0 : index
    %22 = vector.load %arg7[%c0_12, %c0_13] : memref<256x128xbf16, #tpu.memory_space<vmem>>, vector<256x128xbf16>
    %cst_14 = arith.constant dense<0.000000e+00> : vector<256x128xf32>
    %23 = tpu.matmul %22, %21, %cst_14 {dimension_numbers = #tpu.dot_dimension_numbers<[1], [0], [0], [1], [0, 0, 1, 1], [], []>} : vector<256x128xbf16>, vector<128x128xbf16>, vector<256x128xf32> -> vector<256x128xf32>
    %c0_15 = arith.constant 0 : index
    %c0_16 = arith.constant 0 : index
    %24 = vector.load %arg9[%c0_15, %c0_16] : memref<1x128xf32, #tpu.memory_space<vmem>>, vector<1x128xf32>
    %25 = vector.broadcast %24 : vector<1x128xf32> to vector<256x128xf32>
    %26 = arith.addf %23, %25 : vector<256x128xf32>
    %cst_17 = arith.constant 0.000000e+00 : f32
    %27 = vector.broadcast %cst_17 : f32 to vector<256x128xf32>
    %28 = arith.maximumf %26, %27 : vector<256x128xf32>
    %29 = arith.truncf %28 : vector<256x128xf32> to vector<256x128xbf16>
    %c0_18 = arith.constant 0 : index
    %c0_19 = arith.constant 0 : index
    %30 = vector.load %arg8[%c0_18, %c0_19] : memref<128x128xbf16, #tpu.memory_space<vmem>>, vector<128x128xbf16>
    %cst_20 = arith.constant dense<0.000000e+00> : vector<256x128xf32>
    %31 = tpu.matmul %29, %30, %cst_20 {dimension_numbers = #tpu.dot_dimension_numbers<[1], [0], [0], [1], [0, 0, 1, 1], [], []>} : vector<256x128xbf16>, vector<128x128xbf16>, vector<256x128xf32> -> vector<256x128xf32>
    %c0_21 = arith.constant 0 : index
    %c0_22 = arith.constant 0 : index
    %32 = vector.load %arg10[%c0_21, %c0_22] : memref<1x128xf32, #tpu.memory_space<vmem>>, vector<1x128xf32>
    %33 = vector.broadcast %32 : vector<1x128xf32> to vector<256x128xf32>
    %34 = arith.addf %31, %33 : vector<256x128xf32>
    %cst_23 = arith.constant 0.000000e+00 : f32
    %35 = vector.broadcast %cst_23 : f32 to vector<256x128xf32>
    %36 = arith.subf %35, %34 : vector<256x128xf32>
    %37 = math.exp %36 : vector<256x128xf32>
    %cst_24 = arith.constant 1.000000e+00 : f32
    %38 = vector.broadcast %cst_24 : f32 to vector<256x128xf32>
    %39 = arith.addf %38, %37 : vector<256x128xf32>
    %40 = tpu.reciprocal %39 {approx = true} : vector<256x128xf32> -> vector<256x128xf32>
    %c0_25 = arith.constant 0 : index
    %c0_26 = arith.constant 0 : index
    %41 = vector.load %arg11[%c0_25, %c0_26] : memref<256x128xf32, #tpu.memory_space<vmem>>, vector<256x128xf32>
    tpu.vector_store %arg11[%c0_25, %c0_26], %40 {strides = array<i32>} : memref<256x128xf32, #tpu.memory_space<vmem>>, vector<256x128xf32>,
    return
  }
  func.func @transform_0(%arg0: i32) -> i32 {
    %c0_i32 = arith.constant 0 : i32
    %c0_i32_0 = arith.constant 0 : i32
    return %c0_i32 : i32
  }
  func.func @transform_1(%arg0: i32) -> (i32, i32) {
    %c0_i32 = arith.constant 0 : i32
    %c0_i32_0 = arith.constant 0 : i32
    return %arg0, %c0_i32 : i32, i32
  }
  func.func @transform_2(%arg0: i32) -> (i32, i32) {
    %c0_i32 = arith.constant 0 : i32
    %c0_i32_0 = arith.constant 0 : i32
    %c0_i32_1 = arith.constant 0 : i32
    return %c0_i32, %c0_i32_0 : i32, i32
  }
  func.func @transform_3(%arg0: i32) -> (i32, i32) {
    %c0_i32 = arith.constant 0 : i32
    %c0_i32_0 = arith.constant 0 : i32
    %c0_i32_1 = arith.constant 0 : i32
    return %c0_i32, %c0_i32_0 : i32, i32
  }
  func.func @transform_4(%arg0: i32) -> (i32, i32) {
    %c0_i32 = arith.constant 0 : i32
    %c0_i32_0 = arith.constant 0 : i32
    %c0_i32_1 = arith.constant 0 : i32
    return %c0_i32, %c0_i32_0 : i32, i32
  }
  func.func @transform_5(%arg0: i32) -> (i32, i32) {
    %c0_i32 = arith.constant 0 : i32
    %c0_i32_0 = arith.constant 0 : i32
    %c0_i32_1 = arith.constant 0 : i32
    return %c0_i32, %c0_i32_0 : i32, i32
  }
  func.func @transform_6(%arg0: i32) -> (i32, i32) {
    %c0_i32 = arith.constant 0 : i32
    %c0_i32_0 = arith.constant 0 : i32
    %c0_i32_1 = arith.constant 0 : i32
    return %c0_i32, %c0_i32_0 : i32, i32
  }
  func.func @transform_7(%arg0: i32) -> (i32, i32) {
    %c0_i32 = arith.constant 0 : i32
    %c0_i32_0 = arith.constant 0 : i32
    %c0_i32_1 = arith.constant 0 : i32
    return %c0_i32, %c0_i32_0 : i32, i32
  }
  func.func @transform_8(%arg0: i32) -> (i32, i32) {
    %c0_i32 = arith.constant 0 : i32
    %c0_i32_0 = arith.constant 0 : i32
    %c0_i32_1 = arith.constant 0 : i32
    return %c0_i32, %c0_i32_0 : i32, i32
  }
  func.func @transform_9(%arg0: i32) -> (i32, i32) {
    %c0_i32 = arith.constant 0 : i32
    %c0_i32_0 = arith.constant 0 : i32
    %c0_i32_1 = arith.constant 0 : i32
    return %c0_i32, %c0_i32_0 : i32, i32
  }
  func.func @transform_10(%arg0: i32) -> (i32, i32) {
    %c0_i32 = arith.constant 0 : i32
    %c0_i32_0 = arith.constant 0 : i32
    return %arg0, %c0_i32 : i32, i32
  }
}

</mosaic_0001>

<bundles_post_ra>
// kernel: forward.1
= control target key start
LH: loop header
LB: loop body
LE: loop exit
PB: predicated region body
PF: predicated region fallthrough
CT: control target
= control target key end

     0   :  { %v2271_v0 = vmov 0   ;;  %v69_v15 = vlaneseq  ;;  %s2955_s2 = inlined_call_operand.vmem [shape: f32[128,1], index: 2, kind: input, shape index: {}]   ;;  %s2956_s4 = inlined_call_operand.vmem [shape: bf16[384,128], index: 4, kind: input, shape index: {}]   ;;  %s2957_s3 = inlined_call_operand.vmem [shape: f32[128,1], index: 3, kind: input, shape index: {}]   ;;  %s2958_s1 = inlined_call_operand.vmem [shape: f32[128,128], index: 1, kind: input, shape index: {}]   ;;  %s2959_s5 = inlined_call_operand.vmem [shape: bf16[128,128], index: 5, kind: input, shape index: {}]   ;;  %s2960_s0 = inlined_call_operand.<no memory space> [shape: f32[1], index: 0, kind: input, shape index: {}]   ;;  %s2961_s6 = inlined_call_operand.vmem [shape: bf16[256,128], index: 6, kind: input, shape index: {}]   ;;  %s2962_s7 = inlined_call_operand.vmem [shape: bf16[128,128], index: 7, kind: input, shape index: {}]   ;;  %s2963_s8 = inlined_call_operand.vmem [shape: f32[1,128], index: 8, kind: input, shape index: {}]   ;;  %s2964_s9 = inlined_call_operand.vmem [shape: f32[1,128], index: 9, kind: input, shape index: {}]   ;;  %s2965_s10 = inlined_call_operand.vmem [shape: f32[256,128], index: 10, kind: output, shape index: {}]  }
   0x1   :  { %2086 = vset.pattern.permute.xlu1 %v2271_v0  ;;  %2085 = vset.pattern.permute.xlu0 %v2271_v0  ;;  %v90_v1 = vld [vmem:[%s2955_s2 + $0x10] sm:$0xff]  ;;  %v88_v2 = vld [vmem:[%s2955_s2] sm:$0xff]  ;;  %v91_v3 = vld [vmem:[%s2955_s2 + $0x18] sm:$0xff] }
   0x2   :  { %116 = vperm.xlu1 %2086, %v90_v1   ;;  %106 = vperm.xlu0 %2085, %v88_v2   ;;  %v89_v4 = vld [vmem:[%s2955_s2 + $0x8] sm:$0xff]  ;;  %v92_v6 = vld [vmem:[%s2955_s2 + $0x20] sm:$0xff]  ;;  %v95_v7 = vld [vmem:[%s2955_s2 + $0x38] sm:$0xff]  ;;  %v2381_v20 = vshrl.u32 %v69_v15, 7 }
   0x3   :  { %v93_v5 = vld [vmem:[%s2955_s2 + $0x28] sm:$0xff]  ;;  %v94_v8 = vld [vmem:[%s2955_s2 + $0x30] sm:$0xff]  ;;  %v2087_v9 = vld [vmem:[%s2956_s4 + $0x40] sm:$0xff]  }
   0x4   :  { %v97_v10 = vld [vmem:[%s2955_s2 + $0x48] sm:$0xff]  ;;  %v2088_v11 = vld [vmem:[%s2956_s4] sm:$0xff]   ;;  %1780 = vmatprep.subr.bf16.mxu0 %v2087_v9  ;;  %v2091_v16 = vld [vmem:[%s2956_s4 + $0x50] sm:$0xff]   ;;  %vm71_vm0 = vcmp.lt.s32.totalorder %v2381_v20, 1  ;;  %vm216_vm1 = vcmp.lt.s32.totalorder %v2381_v20, 7 }
   0x5   :  { %v2089_v12 = vld [vmem:[%s2956_s4 + $0x48] sm:$0xff]   ;;  %v96_v13 = vld [vmem:[%s2955_s2 + $0x40] sm:$0xff]  ;;  %1781 = vmatpush3.bf16.msra.mxu0 %v2088_v11  ;;  %v2092_v19 = vld [vmem:[%s2956_s4 + $0x10] sm:$0xff]  }
   0x6   :  { %121 = vperm.xlu1 %2086, %v91_v3   ;;  %111 = vperm.xlu0 %2085, %v89_v4   ;;  %v2090_v14 = vld [vmem:[%s2956_s4 + $0x8] sm:$0xff]   ;;  %v233_v18 = vld [vmem:[%s2957_s3] sm:$0xff]  ;;  %v236_v21 = vld [vmem:[%s2957_s3 + $0x18] sm:$0xff] }
   0x7   :  { %1782 = vmatprep.subr.bf16.mxu0 %v2089_v12  ;;  %v234_v17 = vld [vmem:[%s2957_s3 + $0x8] sm:$0xff]  ;;  %v235_v22 = vld [vmem:[%s2957_s3 + $0x10] sm:$0xff]  ;;  %v2093_v23 = vld [vmem:[%s2956_s4 + $0x58] sm:$0xff]  }
   0x8   :  { %v2094_v24 = vld [vmem:[%s2956_s4 + $0x18] sm:$0xff]   ;;  %v2098_v25 = vld [vmem:[%s2956_s4 + $0x80] sm:$0xff]   ;;  %v38_v27 = vld [vmem:[%s2958_s1 + $0x8] sm:$0xff] }
   0x9   :  { %1783 = vmatpush3.bf16.msra.mxu0 %v2090_v14  ;;  %v2095_v26 = vld [vmem:[%s2956_s4 + $0x60] sm:$0xff]   ;;  %v99_v28 = vld [vmem:[%s2955_s2 + $0x58] sm:$0xff]  ;;  %v98_v29 = vld [vmem:[%s2955_s2 + $0x50] sm:$0xff]  ;;  %1924 = vmatprep.subr.bf16.mxu1 %v2098_v25  ;;  %v54_v31 = vrot.slane %v38_v27, 7  ;;  %v201_v34 = vrot.slane %v38_v27, 1 }
   0xa   :  { %131 = vperm.xlu1 %2086, %v93_v5   ;;  %126 = vperm.xlu0 %2085, %v92_v6   ;;  %v2414_v30 = vld [vmem:[%s2958_s1 + $0x10] sm:$0xff]  ;;  %v2419_v32 = vld [vmem:[%s2958_s1] sm:$0xff]  ;;  %v2424_v33 = vld [vmem:[%s2958_s1 + $0x78] sm:$0xff] }
   0xb   :  { %1784 = vmatprep.subr.bf16.mxu0 %v2091_v16  ;;  %v2096_v35 = vld [vmem:[%s2956_s4 + $0x20] sm:$0xff]   ;;  %v55_v36 = vrot.slane %v2414_v30, 7  ;;  %v53_v37 = vrot.slane %v2419_v32, 7  ;;  %v68_v38 = vrot.slane %v2424_v33, 7  ;;  %v346_v39 = vpack.c.bf16 %v38_v27, %v2419_v32  ;;  %1925 = vmatpush3.bf16.msra.mxu1 %v2098_v25  ;;  %v2101_v42 = vld [vmem:[%s2956_s4 + $0x88] sm:$0xff]   ;;  %v2104_v50 = vld [vmem:[%s2956_s4 + $0x90] sm:$0xff]  }
   0xc   :  { %v202_v44 = vrot.slane %v2414_v30, 1  ;;  %v238_v45 = vld [vmem:[%s2957_s3 + $0x28] sm:$0xff]  ;;  %v200_v47 = vrot.slane %v2419_v32, 1  ;;  %v237_v48 = vld [vmem:[%s2957_s3 + $0x20] sm:$0xff]  ;;  %1926 = vmatprep.subr.bf16.mxu1 %v2101_v42  ;;  %v2100_v53 = vld [vmem:[%s2956_s4 + $0x70] sm:$0xff]   ;;  %v215_v12 = vrot.slane %v2424_v33, 1 }
   0xd   :  { %1785 = vmatpush3.bf16.msra.mxu0 %v2092_v19  ;;  %v2438_v40 = vsel %vm71_vm0, %v54_v31, %v55_v36  ;;  %v2444_v41 = vsel %vm71_vm0, %v68_v38, %v53_v37  ;;  %v2451_v43 = vsel %vm71_vm0, %v53_v37, %v54_v31  ;;  %595 = vmatprep.mubr.bf16.mxu0 %v346_v39  ;;  %v2097_v46 = vld [vmem:[%s2956_s4 + $0x68] sm:$0xff]   ;;  %v240_v54 = vld [vmem:[%s2957_s3 + $0x38] sm:$0xff]  ;;  %v239_v56 = vld [vmem:[%s2957_s3 + $0x30] sm:$0xff] }
   0xe   :  { %141 = vperm.xlu1 %2086, %v95_v7   ;;  %136 = vperm.xlu0 %2085, %v94_v8   ;;  %v2468_v49 = vsel %vm216_vm1, %v201_v34, %v202_v44  ;;  %v2477_v51 = vsel %vm216_vm1, %v200_v47, %v201_v34  ;;  %v2099_v52 = vld [vmem:[%s2956_s4 + $0x28] sm:$0xff]   ;;  %v2106_v55 = vld [vmem:[%s2956_s4 + $0x98] sm:$0xff]   ;;  %v2102_v57 = vld [vmem:[%s2956_s4 + $0x30] sm:$0xff]  }
   0xf   :  { %1786 = vmatprep.subr.bf16.mxu0 %v2093_v23  ;;  %1927 = vmatpush3.bf16.msra.mxu1 %v2101_v42  ;;  %v2103_v58 = vld [vmem:[%s2956_s4 + $0x78] sm:$0xff]   ;;  %v2107_v59 = vld [vmem:[%s2956_s4 + $0xa0] sm:$0xff]   ;;  %v101_v60 = vld [vmem:[%s2955_s2 + $0x68] sm:$0xff] }
  0x10   :  { %1928 = vmatprep.subr.bf16.mxu1 %v2104_v50  ;;  %v100_v61 = vld [vmem:[%s2955_s2 + $0x60] sm:$0xff]  ;;  %v2105_v62 = vld [vmem:[%s2956_s4 + $0x38] sm:$0xff]   ;;  %v2108_v63 = vld [vmem:[%s2956_s4 + $0xa8] sm:$0xff]  }
  0x11   :  { %1787 = vmatpush3.bf16.msra.mxu0 %v2094_v24  ;;  %v242_v0 = vld [vmem:[%s2957_s3 + $0x48] sm:$0xff]  ;;  %v241_v1 = vld [vmem:[%s2957_s3 + $0x40] sm:$0xff]  ;;  %v2109_v2 = vld [vmem:[%s2956_s4 + $0xb0] sm:$0xff]  }
  0x12   :  { %151 = vperm.xlu1 %2086, %v97_v10   ;;  %146 = vperm.xlu0 %2085, %v96_v13   ;;  %v244_v3 = vld [vmem:[%s2957_s3 + $0x58] sm:$0xff]  ;;  %v243_v4 = vld [vmem:[%s2957_s3 + $0x50] sm:$0xff]  ;;  %v246_v8 = vld [vmem:[%s2957_s3 + $0x68] sm:$0xff]  ;;  %v2558_v13 = vsel %vm216_vm1, %v215_v12, %v200_v47 }
  0x13   :  { %1788 = vmatprep.subr.bf16.mxu0 %v2095_v26  ;;  %1929 = vmatpush3.bf16.msra.mxu1 %v2104_v50  ;;  %v2110_v5 = vld [vmem:[%s2956_s4 + $0xb8] sm:$0xff]   ;;  %v102_v7 = vld [vmem:[%s2955_s2 + $0x70] sm:$0xff]  ;;  %v245_v9 = vld [vmem:[%s2957_s3 + $0x60] sm:$0xff] }
  0x14   :  { %1930 = vmatprep.subr.bf16.mxu1 %v2106_v55  ;;  %v103_v6 = vld [vmem:[%s2955_s2 + $0x78] sm:$0xff]  ;;  %v247_v11 = vld [vmem:[%s2957_s3 + $0x70] sm:$0xff]  ;;  %v2563_v14 = vld [vmem:[%s2959_s5] sm:$0xff]  }
  0x15   :  { %1789 = vmatpush3.bf16.msra.mxu0 %v2096_v35  ;;  %v248_v10 = vld [vmem:[%s2957_s3 + $0x78] sm:$0xff]  ;;  %v41_v34 = vld [vmem:[%s2958_s1 + $0x20] sm:$0xff]  ;;  %v42_v35 = vld [vmem:[%s2958_s1 + $0x28] sm:$0xff] }
  0x16   :  { %256 = vperm.xlu1 %2086, %v234_v17   ;;  %251 = vperm.xlu0 %2085, %v233_v18   ;;  %v40_v15 = vld [vmem:[%s2958_s1 + $0x18] sm:$0xff]  ;;  %v58_v37 = vrot.slane %v42_v35, 7  ;;  %v43_v47 = vld [vmem:[%s2958_s1 + $0x30] sm:$0xff] }
  0x17   :  { %1790 = vmatprep.subr.bf16.mxu0 %v2097_v46  ;;  %1931 = vmatpush3.bf16.msra.mxu1 %v2106_v55  ;;  %v56_v16 = vrot.slane %v40_v15, 7  ;;  %v349_v27 = vpack.c.bf16 %v40_v15, %v2414_v30  ;;  %v203_v50 = vrot.slane %v40_v15, 1  ;;  %v59_v55 = vrot.slane %v43_v47, 7  ;;  %v46_v30 = vld [vmem:[%s2958_s1 + $0x48] sm:$0xff]  ;;  %v2113_v20 = vld [vmem:[%s2959_s5 + $0x10] sm:$0xff]  }
  0x18   :  { %1932 = vmatprep.subr.bf16.mxu1 %v2107_v59  ;;  %v62_v15 = vrot.slane %v46_v30, 7 }
  0x19   :  { %1791 = vmatpush3.bf16.msra.mxu0 %v2099_v52  ;;  %v84_v19 = vsel %vm71_vm0, %v55_v36, %v56_v16  ;;  %v57_v36 = vrot.slane %v41_v34, 7  ;;  %v204_v52 = vrot.slane %v41_v34, 1 }
  0x1a   :  { %266 = vperm.xlu1 %2086, %v236_v21   ;;  %261 = vperm.xlu0 %2085, %v235_v22  }
  0x1b   :  { %1792 = vmatprep.subr.bf16.mxu0 %v2100_v53  ;;  %1933 = vmatpush3.bf16.msra.mxu1 %v2107_v59  ;;  %v82_v42 = vsel %vm71_vm0, %v57_v36, %v58_v37 }
  0x1c   :  { %1934 = vmatprep.subr.bf16.mxu1 %v2108_v63 }
  0x1d   :  { %1793 = vmatpush3.bf16.msra.mxu0 %v2102_v57 }
  0x1e   :  { %161 = vperm.xlu1 %2086, %v99_v28   ;;  %156 = vperm.xlu0 %2085, %v98_v29  }
  0x1f   :  { %1794 = vmatprep.subr.bf16.mxu0 %v2103_v58  ;;  %1935 = vmatpush3.bf16.msra.mxu1 %v2108_v63 }
  0x20   :  { %1936 = vmatprep.subr.bf16.mxu1 %v2109_v2 }
  0x21   :  { %1795 = vmatpush3.bf16.msra.mxu0 %v2105_v62  ;;  %v229_v62 = vsel %vm216_vm1, %v202_v44, %v203_v50 }
  0x22   :  { %276 = vperm.xlu1 %2086, %v238_v45   ;;  %271 = vperm.xlu0 %2085, %v237_v48   ;;  %v44_v48 = vld [vmem:[%s2958_s1 + $0x38] sm:$0xff] }
  0x23   :  { %1937 = vmatpush3.bf16.msra.mxu1 %v2109_v2  ;;  %v355_v63 = vpack.c.bf16 %v44_v48, %v43_v47 }
  0x24   :  { %1938 = vmatprep.subr.bf16.mxu1 %v2110_v5 }
  0x26   :  { %286 = vperm.xlu1 %2086, %v240_v54   ;;  %281 = vperm.xlu0 %2085, %v239_v56   ;;  %v60_v56 = vrot.slane %v44_v48, 7 }
  0x27   :  { %1939 = vmatpush3.bf16.msra.mxu1 %v2110_v5 }
  0x28   :  { %1956 = vmatprep.subr.bf16.mxu1 %v2563_v14  ;;  %v80_v2 = vsel %vm71_vm0, %v59_v55, %v60_v56 }
  0x2a   :  { %171 = vperm.xlu1 %2086, %v101_v60   ;;  %166 = vperm.xlu0 %2085, %v100_v61   ;;  %v228_v61 = vsel %vm216_vm1, %v203_v50, %v204_v52  ;;  %v209_v50 = vrot.slane %v46_v30, 1 }
  0x2e   :  { %296 = vperm.xlu1 %2086, %v242_v0   ;;  %291 = vperm.xlu0 %2085, %v241_v1  }
  0x32   :  { %306 = vperm.xlu1 %2086, %v244_v3   ;;  %301 = vperm.xlu0 %2085, %v243_v4   ;;  %v81_v3 = vsel %vm71_vm0, %v58_v37, %v59_v55 }
  0x36   :  { %181 = vperm.xlu1 %2086, %v103_v6   ;;  %176 = vperm.xlu0 %2085, %v102_v7   ;;  %v205_v6 = vrot.slane %v42_v35, 1  ;;  %v206_v7 = vrot.slane %v43_v47, 1 }
  0x3a   :  { %316 = vperm.xlu1 %2086, %v246_v8   ;;  %311 = vperm.xlu0 %2085, %v245_v9  }
  0x3e   :  { %326 = vperm.xlu1 %2086, %v248_v10   ;;  %321 = vperm.xlu0 %2085, %v247_v11  }
  0x81   :  { %v117_v17 = vpop.permute.xlu1 %116  ;;  %v107_v18 = vpop.permute.xlu0 %106 }
  0x82   :  { %v186_v21 = vmul.f32 %v117_v17, %v2438_v40  ;;  %v184_v24 = vmul.f32 %v107_v18, %v2444_v41  ;;  %v352_v41 = vpack.c.bf16 %v42_v35, %v41_v34  ;;  %v227_v18 = vsel %vm216_vm1, %v204_v52, %v205_v6 }
  0x85   :  { %v122_v22 = vpop.permute.xlu1 %121  ;;  %v112_v23 = vpop.permute.xlu0 %111 }
  0x86   :  { %v187_v25 = vmul.f32 %v122_v22, %v84_v19  ;;  %v185_v26 = vmul.f32 %v112_v23, %v2451_v43  ;;  %v83_v43 = vsel %vm71_vm0, %v56_v16, %v57_v36  ;;  %v226_v19 = vsel %vm216_vm1, %v205_v6, %v206_v7 }
  0x88   :  { %v348_v28 = vpack.c.bf16 %v187_v25, %v186_v21  ;;  %v345_v29 = vpack.c.bf16 %v185_v26, %v184_v24  ;;  %v207_v21 = vrot.slane %v44_v48, 1 }
  0x89   :  { %v132_v31 = vpop.permute.xlu1 %131  ;;  %v127_v32 = vpop.permute.xlu0 %126 }
  0x8a   :  { %596 = vmatmul.mubr.bf16.vlgmr.msra.gmra.mrb[0].mxu0 %v345_v29  ;;  %v189_v53 = vmul.f32 %v132_v31, %v82_v42  ;;  %v188_v54 = vmul.f32 %v127_v32, %v83_v43  ;;  %v47_v29 = vld [vmem:[%s2958_s1 + $0x50] sm:$0xff]  ;;  %v48_v31 = vld [vmem:[%s2958_s1 + $0x58] sm:$0xff]  ;;  %v225_v35 = vsel %vm216_vm1, %v206_v7, %v207_v21 }
  0x8b   :  { %603 = vmatprep.mubr.bf16.mxu0 %v349_v27  ;;  %v210_v52 = vrot.slane %v47_v29, 1 }
  0x8c   :  { %v351_v0 = vpack.c.bf16 %v189_v53, %v188_v54  ;;  %v361_v53 = vpack.c.bf16 %v48_v31, %v47_v29 }
  0x8d   :  { %v142_v39 = vpop.permute.xlu1 %141  ;;  %v137_v40 = vpop.permute.xlu0 %136 }
  0x8e   :  { %v191_v8 = vmul.f32 %v142_v39, %v80_v2  ;;  %v190_v9 = vmul.f32 %v137_v40, %v81_v3  ;;  %v63_v40 = vrot.slane %v47_v29, 7 }
  0x90   :  { %v354_v24 = vpack.c.bf16 %v191_v8, %v190_v9 }
  0x91   :  { %v152_v45 = vpop.permute.xlu1 %151  ;;  %v147_v46 = vpop.permute.xlu0 %146 }
  0x92   :  { %604 = vmatmul.mubr.bf16.gmra.mrb[4].mxu0 %v348_v28 }
  0x93   :  { %611 = vmatprep.mubr.bf16.mxu0 %v352_v41  ;;  %v64_v41 = vrot.slane %v48_v31, 7 }
  0x95   :  { %v257_v57 = vpop.permute.xlu1 %256  ;;  %v252_v58 = vpop.permute.xlu0 %251 }
  0x96   :  { %v330_v59 = vmul.f32 %v257_v57, %v2468_v49  ;;  %v329_v60 = vmul.f32 %v252_v58, %v2477_v51  ;;  %v45_v51 = vld [vmem:[%s2958_s1 + $0x40] sm:$0xff] }
  0x97   :  { %v61_v11 = vrot.slane %v45_v51, 7  ;;  %v208_v22 = vrot.slane %v45_v51, 1  ;;  %v358_v23 = vpack.c.bf16 %v46_v30, %v45_v51  ;;  %v49_v58 = vld [vmem:[%s2958_s1 + $0x60] sm:$0xff] }
  0x98   :  { %v347_v1 = vpack.c.bf16 %v330_v59, %v329_v60  ;;  %v50_v59 = vld [vmem:[%s2958_s1 + $0x68] sm:$0xff]  ;;  %v222_v60 = vsel %vm216_vm1, %v209_v50, %v210_v52  ;;  %v65_v2 = vrot.slane %v49_v58, 7 }
  0x99   :  { %v267_v49 = vpop.permute.xlu1 %266  ;;  %v262_v4 = vpop.permute.xlu0 %261  ;;  %v78_v25 = vsel %vm71_vm0, %v61_v11, %v62_v15  ;;  %v79_v26 = vsel %vm71_vm0, %v60_v56, %v61_v11  ;;  %v76_v56 = vsel %vm71_vm0, %v63_v40, %v64_v41  ;;  %v66_v3 = vrot.slane %v50_v59, 7 }
  0x9a   :  { %v332_v44 = vmul.f32 %v267_v49, %v228_v61  ;;  %v331_v5 = vmul.f32 %v262_v4, %v229_v62  ;;  %612 = vmatmul.mubr.bf16.gmra.mrb[8].mxu0 %v351_v0  ;;  %1940 = vmatprep.mubr.bf16.mxu1 %v347_v1  ;;  %v193_v36 = vmul.f32 %v152_v45, %v78_v25  ;;  %v211_v62 = vrot.slane %v48_v31, 1 }
  0x9b   :  { %619 = vmatprep.mubr.bf16.mxu0 %v355_v63  ;;  %v192_v37 = vmul.f32 %v147_v46, %v79_v26  ;;  %v77_v45 = vsel %vm71_vm0, %v62_v15, %v63_v40  ;;  %v223_v61 = vsel %vm216_vm1, %v208_v22, %v209_v50  ;;  %v212_v63 = vrot.slane %v49_v58, 1 }
  0x9c   :  { %v350_v10 = vpack.c.bf16 %v332_v44, %v331_v5  ;;  %v221_v5 = vsel %vm216_vm1, %v210_v52, %v211_v62  ;;  %v364_v6 = vpack.c.bf16 %v50_v59, %v49_v58  ;;  %v74_v9 = vsel %vm71_vm0, %v65_v2, %v66_v3 }
  0x9d   :  { %v162_v16 = vpop.permute.xlu1 %161  ;;  %v157_v17 = vpop.permute.xlu0 %156  ;;  %v357_v54 = vpack.c.bf16 %v193_v36, %v192_v37  ;;  %v220_v44 = vsel %vm216_vm1, %v211_v62, %v212_v63 }
  0x9e   :  { %1941 = vmatmul.mubr.bf16.vlgmr.msra.gmra.mrb[0].mxu1 %v350_v10  ;;  %v195_v0 = vmul.f32 %v162_v16, %v76_v56  ;;  %v194_v1 = vmul.f32 %v157_v17, %v77_v45  ;;  %v75_v10 = vsel %vm71_vm0, %v64_v41, %v65_v2  ;;  %v2118_v56 = vld [vmem:[%s2959_s5 + $0x38] sm:$0xff]  }
  0x9f   :  { %1957 = vmatpush3.bf16.msra.mxu1 %v2563_v14  ;;  %v224_v14 = vsel %vm216_vm1, %v207_v21, %v208_v22 }
  0xa0   :  { %v360_v7 = vpack.c.bf16 %v195_v0, %v194_v1 }
  0xa1   :  { %v277_v27 = vpop.permute.xlu1 %276  ;;  %v272_v28 = vpop.permute.xlu0 %271 }
  0xa2   :  { %v334_v32 = vmul.f32 %v277_v27, %v226_v19  ;;  %v333_v34 = vmul.f32 %v272_v28, %v227_v18  ;;  %620 = vmatmul.mubr.bf16.gmra.mrb[12].mxu0 %v354_v24  ;;  %v51_v18 = vld [vmem:[%s2958_s1 + $0x70] sm:$0xff]  ;;  %v213_v19 = vrot.slane %v50_v59, 1 }
  0xa3   :  { %627 = vmatprep.mubr.bf16.mxu0 %v358_v23  ;;  %v214_v21 = vrot.slane %v51_v18, 1  ;;  %v67_v26 = vrot.slane %v51_v18, 7  ;;  %v367_v31 = vpack.c.bf16 %v2424_v33, %v51_v18  ;;  %v2112_v33 = vld [vmem:[%s2959_s5 + $0x8] sm:$0xff]  }
  0xa4   :  { %v353_v39 = vpack.c.bf16 %v334_v32, %v333_v34  ;;  %v219_v29 = vsel %vm216_vm1, %v212_v63, %v213_v19  ;;  %1958 = vmatprep.subr.bf16.mxu1 %v2112_v33 }
  0xa5   :  { %v287_v42 = vpop.permute.xlu1 %286  ;;  %v282_v43 = vpop.permute.xlu0 %281  ;;  %v218_v28 = vsel %vm216_vm1, %v213_v19, %v214_v21  ;;  %v72_v34 = vsel %vm71_vm0, %v67_v26, %v68_v38  ;;  %v217_v40 = vsel %vm216_vm1, %v214_v21, %v215_v12  ;;  %1959 = vmatpush3.bf16.msra.mxu1 %v2112_v33  ;;  %v2114_v12 = vld [vmem:[%s2959_s5 + $0x18] sm:$0xff]  }
  0xa6   :  { %v336_v47 = vmul.f32 %v287_v42, %v224_v14  ;;  %v335_v48 = vmul.f32 %v282_v43, %v225_v35  ;;  %1944 = vmatprep.mubr.bf16.mxu1 %v353_v39  ;;  %v73_v14 = vsel %vm71_vm0, %v66_v3, %v67_v26  ;;  %1960 = vmatprep.subr.bf16.mxu1 %v2113_v20 }
  0xa8   :  { %v356_v55 = vpack.c.bf16 %v336_v47, %v335_v48 }
  0xa9   :  { %v172_v46 = vpop.permute.xlu1 %171  ;;  %v167_v57 = vpop.permute.xlu0 %166  ;;  %1961 = vmatpush3.bf16.msra.mxu1 %v2113_v20 }
  0xaa   :  { %628 = vmatmul.mubr.bf16.gmra.mrb[16].mxu0 %v357_v54  ;;  %1945 = vmatmul.mubr.bf16.gmra.mrb[4].mxu1 %v356_v55  ;;  %v197_v22 = vmul.f32 %v172_v46, %v74_v9  ;;  %v196_v23 = vmul.f32 %v167_v57, %v75_v10  ;;  %v2116_v54 = vld [vmem:[%s2959_s5 + $0x28] sm:$0xff]   ;;  %v2117_v55 = vld [vmem:[%s2959_s5 + $0x30] sm:$0xff]  }
  0xab   :  { %635 = vmatprep.mubr.bf16.mxu0 %v361_v53  ;;  %1962 = vmatprep.subr.bf16.mxu1 %v2114_v12 }
  0xac   :  { %v363_v32 = vpack.c.bf16 %v197_v22, %v196_v23 }
  0xad   :  { %v297_v49 = vpop.permute.xlu1 %296  ;;  %v292_v4 = vpop.permute.xlu0 %291  ;;  %1963 = vmatpush3.bf16.msra.mxu1 %v2114_v12 }
  0xae   :  { %v338_v51 = vmul.f32 %v297_v49, %v222_v60  ;;  %v337_v30 = vmul.f32 %v292_v4, %v223_v61  ;;  %v2695_v4 = vstv %s2960_s0 }
  0xb0   :  { %v359_v8 = vpack.c.bf16 %v338_v51, %v337_v30 }
  0xb1   :  { %v307_v11 = vpop.permute.xlu1 %306  ;;  %v302_v15 = vpop.permute.xlu0 %301 }
  0xb2   :  { %v340_v16 = vmul.f32 %v307_v11, %v220_v44  ;;  %v339_v17 = vmul.f32 %v302_v15, %v221_v5  ;;  %636 = vmatmul.mubr.bf16.gmra.mrb[20].mxu0 %v360_v7  ;;  %1948 = vmatprep.mubr.bf16.mxu1 %v359_v8 }
  0xb3   :  { %643 = vmatprep.mubr.bf16.mxu0 %v364_v6 }
  0xb4   :  { %v362_v24 = vpack.c.bf16 %v340_v16, %v339_v17 }
  0xb5   :  { %v182_v25 = vpop.permute.xlu1 %181  ;;  %v177_v27 = vpop.permute.xlu0 %176 }
  0xb6   :  { %1949 = vmatmul.mubr.bf16.gmra.mrb[8].mxu1 %v362_v24  ;;  %v199_v41 = vmul.f32 %v182_v25, %v72_v34  ;;  %v198_v42 = vmul.f32 %v177_v27, %v73_v14 }
  0xb8   :  { %v366_v52 = vpack.c.bf16 %v199_v41, %v198_v42 }
  0xb9   :  { %v317_v35 = vpop.permute.xlu1 %316  ;;  %v312_v36 = vpop.permute.xlu0 %311 }
  0xba   :  { %v342_v37 = vmul.f32 %v317_v35, %v218_v28  ;;  %v341_v39 = vmul.f32 %v312_v36, %v219_v29  ;;  %644 = vmatmul.mubr.bf16.gmra.mrb[24].mxu0 %v363_v32 }
  0xbb   :  { %651 = vmatprep.mubr.bf16.mxu0 %v367_v31 }
  0xbc   :  { %v365_v43 = vpack.c.bf16 %v342_v37, %v341_v39 }
  0xbd   :  { %v327_v47 = vpop.permute.xlu1 %326  ;;  %v322_v48 = vpop.permute.xlu0 %321 }
  0xbe   :  { %v344_v38 = vmul.f32 %v327_v47, %v2558_v13  ;;  %v343_v50 = vmul.f32 %v322_v48, %v217_v40  ;;  %1952 = vmatprep.mubr.bf16.mxu1 %v365_v43  ;;  %v2115_v13 = vld [vmem:[%s2959_s5 + $0x20] sm:$0xff]  }
  0xbf   :  { %1964 = vmatprep.subr.bf16.mxu1 %v2115_v13 }
  0xc0   :  { %v368_v53 = vpack.c.bf16 %v344_v38, %v343_v50  ;;  %1965 = vmatpush3.bf16.msra.mxu1 %v2115_v13 }
  0xc1   :  { %1966 = vmatprep.subr.bf16.mxu1 %v2116_v54 }
  0xc2   :  { %652 = vmatmul.mubr.bf16.gmra.mrb[28].mxu0 %v366_v52  ;;  %1953 = vmatmul.mubr.bf16.gmra.mrb[12].mxu1 %v368_v53 }
  0xc4   :  { %1967 = vmatpush3.bf16.msra.mxu1 %v2116_v54 }
  0xc5   :  { %1968 = vmatprep.subr.bf16.mxu1 %v2117_v55 }
  0xc8   :  { %1969 = vmatpush3.bf16.msra.mxu1 %v2117_v55 }
  0xc9   :  { %1970 = vmatprep.subr.bf16.mxu1 %v2118_v56 }
  0xcc   :  { %1971 = vmatpush3.bf16.msra.mxu1 %v2118_v56 }
 0x15d   :  { %v1796_v45 = vpop.f32.mrb[0].mxu0 }
 0x15e   :  { %v1797_v46 = vpop.f32.mrb[1].mxu0 }
 0x15f   :  { %v1798_v57 = vadd.f32 %v1797_v46, %v1796_v45  ;;  %v1799_v58 = vpop.f32.mrb[2].mxu0 }
 0x160   :  { %v1800_v59 = vpop.f32.mrb[3].mxu0 }
 0x161   :  { %v1801_v60 = vadd.f32 %v1800_v59, %v1799_v58  ;;  %v598_v8 = vadd.f32 %v1798_v57, %v2695_v4 }
 0x163   :  { %v601_v17 = vadd.f32 %v1801_v60, %v2695_v4 }
 0x165   :  { %v1802_v61 = vpop.f32.mrb[4].mxu0 }
 0x166   :  { %v1803_v62 = vpop.f32.mrb[5].mxu0 }
 0x167   :  { %v1804_v63 = vadd.f32 %v1803_v62, %v1802_v61  ;;  %v1805_v0 = vpop.f32.mrb[6].mxu0 }
 0x168   :  { %v1806_v1 = vpop.f32.mrb[7].mxu0 }
 0x169   :  { %v1807_v2 = vadd.f32 %v1806_v1, %v1805_v0  ;;  %v606_v5 = vadd.f32 %v1804_v63, %v2695_v4 }
 0x16b   :  { %v609_v11 = vadd.f32 %v1807_v2, %v2695_v4 }
 0x16d   :  { %v1808_v3 = vpop.f32.mrb[8].mxu0 }
 0x16e   :  { %v1809_v49 = vpop.f32.mrb[9].mxu0 }
 0x16f   :  { %v1810_v51 = vadd.f32 %v1809_v49, %v1808_v3  ;;  %v1811_v30 = vpop.f32.mrb[10].mxu0 }
 0x170   :  { %v1812_v44 = vpop.f32.mrb[11].mxu0 }
 0x171   :  { %v1813_v6 = vadd.f32 %v1812_v44, %v1811_v30  ;;  %v1942_v7 = vpop.f32.mrb[0].mxu1  ;;  %v614_v39 = vadd.f32 %v1810_v51, %v2695_v4 }
 0x172   :  { %v703_v9 = vadd.f32 %v1942_v7, %v606_v5  ;;  %v694_v10 = vpop.f32.mrb[1].mxu1 }
 0x173   :  { %v695_v15 = vadd.f32 %v694_v10, %v598_v8  ;;  %v1943_v16 = vpop.f32.mrb[2].mxu1  ;;  %v617_v52 = vadd.f32 %v1813_v6, %v2695_v4 }
 0x174   :  { %v706_v18 = vadd.f32 %v1943_v16, %v609_v11  ;;  %v697_v19 = vpop.f32.mrb[3].mxu1  ;;  %v759_v23 = vmax.f32 %v703_v9, 0.0 }
 0x175   :  { %v698_v21 = vadd.f32 %v697_v19, %v601_v17  ;;  %v1814_v22 = vpop.f32.mrb[12].mxu0  ;;  %v757_v26 = vmax.f32 %v695_v15, 0.0 }
 0x176   :  { %v760_v24 = vmax.f32 %v706_v18, 0.0  ;;  %v1815_v25 = vpop.f32.mrb[13].mxu0 }
 0x177   :  { %v758_v27 = vmax.f32 %v698_v21, 0.0  ;;  %v1816_v28 = vadd.f32 %v1815_v25, %v1814_v22  ;;  %v1817_v29 = vpop.f32.mrb[14].mxu0 }
 0x178   :  { %v774_v31 = vpack.c.bf16 %v760_v24, %v759_v23  ;;  %v1818_v32 = vpop.f32.mrb[15].mxu0 }
 0x179   :  { %v773_v34 = vpack.c.bf16 %v758_v27, %v757_v26  ;;  %v1819_v14 = vadd.f32 %v1818_v32, %v1817_v29  ;;  %v622_v35 = vadd.f32 %v1816_v28, %v2695_v4 }
 0x17b   :  { %1972 = vmatprep.mubr.bf16.mxu1 %v773_v34  ;;  %v625_v43 = vadd.f32 %v1819_v14, %v2695_v4 }
 0x17c   :  { %1973 = vmatmul.mubr.bf16.vlgmr.msra.gmra.mrb[16].mxu1 %v774_v31 }
 0x17d   :  { %v1820_v36 = vpop.f32.mrb[16].mxu0  ;;  %v1946_v37 = vpop.f32.mrb[4].mxu1 }
 0x17e   :  { %v719_v40 = vadd.f32 %v1946_v37, %v622_v35  ;;  %v1821_v41 = vpop.f32.mrb[17].mxu0  ;;  %v710_v42 = vpop.f32.mrb[5].mxu1 }
 0x17f   :  { %v1822_v47 = vadd.f32 %v1821_v41, %v1820_v36  ;;  %v711_v48 = vadd.f32 %v710_v42, %v614_v39  ;;  %v1823_v38 = vpop.f32.mrb[18].mxu0  ;;  %v1947_v50 = vpop.f32.mrb[6].mxu1 }
 0x180   :  { %v722_v53 = vadd.f32 %v1947_v50, %v625_v43  ;;  %v1824_v33 = vpop.f32.mrb[19].mxu0  ;;  %v713_v20 = vpop.f32.mrb[7].mxu1  ;;  %v763_v54 = vmax.f32 %v719_v40, 0.0 }
 0x181   :  { %v1825_v12 = vadd.f32 %v1824_v33, %v1823_v38  ;;  %v714_v13 = vadd.f32 %v713_v20, %v617_v52  ;;  %v761_v56 = vmax.f32 %v711_v48, 0.0  ;;  %v630_v2 = vadd.f32 %v1822_v47, %v2695_v4  ;;  %v2119_v20 = vld [vmem:[%s2961_s6] sm:$0xff]  }
 0x182   :  { %v764_v55 = vmax.f32 %v722_v53, 0.0  ;;  %2004 = vmatprep.mubr.bf16.mxu0 %v2119_v20 }
 0x183   :  { %v762_v45 = vmax.f32 %v714_v13, 0.0  ;;  %v633_v5 = vadd.f32 %v1825_v12, %v2695_v4  ;;  %v2135_v12 = vld [vmem:[%s2962_s7] sm:$0xff]   ;;  %v2137_v13 = vld [vmem:[%s2962_s7 + $0x10] sm:$0xff]  }
 0x184   :  { %v776_v46 = vpack.c.bf16 %v764_v55, %v763_v54  ;;  %2036 = vmatprep.subr.bf16.mxu1 %v2135_v12  ;;  %v2138_v54 = vld [vmem:[%s2962_s7 + $0x18] sm:$0xff]   ;;  %v2139_v55 = vld [vmem:[%s2962_s7 + $0x20] sm:$0xff]  }
 0x185   :  { %v775_v57 = vpack.c.bf16 %v762_v45, %v761_v56  ;;  %v1826_v58 = vpop.f32.mrb[20].mxu0  ;;  %2037 = vmatpush3.bf16.msra.mxu1 %v2135_v12  ;;  %v2140_v56 = vld [vmem:[%s2962_s7 + $0x28] sm:$0xff]  }
 0x186   :  { %v1827_v59 = vpop.f32.mrb[21].mxu0 }
 0x187   :  { %v1828_v60 = vadd.f32 %v1827_v59, %v1826_v58  ;;  %v1829_v61 = vpop.f32.mrb[22].mxu0  ;;  %1976 = vmatprep.mubr.bf16.mxu1 %v775_v57 }
 0x188   :  { %v1830_v62 = vpop.f32.mrb[23].mxu0  ;;  %1977 = vmatmul.mubr.bf16.gmra.mrb[20].mxu1 %v776_v46 }
 0x189   :  { %v1831_v63 = vadd.f32 %v1830_v62, %v1829_v61  ;;  %v638_v0 = vadd.f32 %v1828_v60, %v2695_v4  ;;  %v1950_v1 = vpop.f32.mrb[8].mxu1 }
 0x18a   :  { %v726_v3 = vpop.f32.mrb[9].mxu1 }
 0x18b   :  { %v735_v49 = vadd.f32 %v1950_v1, %v638_v0  ;;  %v727_v51 = vadd.f32 %v726_v3, %v630_v2  ;;  %v641_v30 = vadd.f32 %v1831_v63, %v2695_v4  ;;  %v1951_v44 = vpop.f32.mrb[10].mxu1 }
 0x18c   :  { %v729_v6 = vpop.f32.mrb[11].mxu1 }
 0x18d   :  { %v738_v7 = vadd.f32 %v1951_v44, %v641_v30  ;;  %v730_v8 = vadd.f32 %v729_v6, %v633_v5  ;;  %v1832_v9 = vpop.f32.mrb[24].mxu0  ;;  %v767_v10 = vmax.f32 %v735_v49, 0.0  ;;  %v765_v15 = vmax.f32 %v727_v51, 0.0 }
 0x18e   :  { %v1833_v11 = vpop.f32.mrb[25].mxu0 }
 0x18f   :  { %v768_v16 = vmax.f32 %v738_v7, 0.0  ;;  %v766_v17 = vmax.f32 %v730_v8, 0.0  ;;  %v1834_v18 = vadd.f32 %v1833_v11, %v1832_v9  ;;  %v1835_v19 = vpop.f32.mrb[26].mxu0 }
 0x190   :  { %v1836_v21 = vpop.f32.mrb[27].mxu0 }
 0x191   :  { %v778_v22 = vpack.c.bf16 %v768_v16, %v767_v10  ;;  %v777_v23 = vpack.c.bf16 %v766_v17, %v765_v15  ;;  %v1837_v24 = vadd.f32 %v1836_v21, %v1835_v19  ;;  %v646_v27 = vadd.f32 %v1834_v18, %v2695_v4  ;;  %v2120_v15 = vld [vmem:[%s2961_s6 + $0x8] sm:$0xff]   ;;  %v2121_v16 = vld [vmem:[%s2961_s6 + $0x10] sm:$0xff]   ;;  %v2122_v17 = vld [vmem:[%s2961_s6 + $0x18] sm:$0xff]  }
 0x192   :  { %v2123_v18 = vld [vmem:[%s2961_s6 + $0x20] sm:$0xff]   ;;  %v2124_v19 = vld [vmem:[%s2961_s6 + $0x28] sm:$0xff]   ;;  %v2125_v21 = vld [vmem:[%s2961_s6 + $0x30] sm:$0xff]  }
 0x193   :  { %1980 = vmatprep.mubr.bf16.mxu1 %v777_v23  ;;  %v649_v35 = vadd.f32 %v1837_v24, %v2695_v4  ;;  %v2127_v23 = vld [vmem:[%s2961_s6 + $0x40] sm:$0xff]   ;;  %v2128_v24 = vld [vmem:[%s2961_s6 + $0x48] sm:$0xff]  }
 0x194   :  { %1981 = vmatmul.mubr.bf16.gmra.mrb[24].mxu1 %v778_v22  ;;  %v2126_v22 = vld [vmem:[%s2961_s6 + $0x38] sm:$0xff]  }
 0x195   :  { %v1838_v25 = vpop.f32.mrb[28].mxu0  ;;  %v1954_v26 = vpop.f32.mrb[12].mxu1 }
 0x196   :  { %v1839_v28 = vpop.f32.mrb[29].mxu0  ;;  %v742_v29 = vpop.f32.mrb[13].mxu1 }
 0x197   :  { %v1840_v31 = vadd.f32 %v1839_v28, %v1838_v25  ;;  %v743_v32 = vadd.f32 %v742_v29, %v646_v27  ;;  %v1841_v34 = vpop.f32.mrb[30].mxu0  ;;  %v1955_v14 = vpop.f32.mrb[14].mxu1  ;;  %v2129_v25 = vld [vmem:[%s2961_s6 + $0x50] sm:$0xff]   ;;  %v2131_v27 = vld [vmem:[%s2961_s6 + $0x60] sm:$0xff]   ;;  %v2132_v28 = vld [vmem:[%s2961_s6 + $0x68] sm:$0xff]  }
 0x198   :  { %v1842_v36 = vpop.f32.mrb[31].mxu0  ;;  %v745_v37 = vpop.f32.mrb[15].mxu1  ;;  %v2133_v29 = vld [vmem:[%s2961_s6 + $0x70] sm:$0xff]  }
 0x199   :  { %v654_v39 = vadd.f32 %v1840_v31, %v2695_v4  ;;  %v1843_v40 = vadd.f32 %v1842_v36, %v1841_v34  ;;  %v746_v41 = vadd.f32 %v745_v37, %v649_v35  ;;  %v769_v43 = vmax.f32 %v743_v32, 0.0  ;;  %v2134_v31 = vld [vmem:[%s2961_s6 + $0x78] sm:$0xff]   ;;  %v2141_v32 = vld [vmem:[%s2962_s7 + $0x30] sm:$0xff]  }
 0x19a   :  { %v2142_v34 = vld [vmem:[%s2962_s7 + $0x38] sm:$0xff]  }
 0x19b   :  { %v751_v42 = vadd.f32 %v1954_v26, %v654_v39  ;;  %v657_v47 = vadd.f32 %v1843_v40, %v2695_v4  ;;  %v770_v48 = vmax.f32 %v746_v41, 0.0  ;;  %v2136_v4 = vld [vmem:[%s2962_s7 + $0x8] sm:$0xff]   ;;  %v2130_v26 = vld [vmem:[%s2961_s6 + $0x58] sm:$0xff]  }
 0x19c   :  { %2038 = vmatprep.subr.bf16.mxu1 %v2136_v4 }
 0x19d   :  { %v754_v38 = vadd.f32 %v1955_v14, %v657_v47  ;;  %v779_v50 = vpack.c.bf16 %v770_v48, %v769_v43  ;;  %v771_v52 = vmax.f32 %v751_v42, 0.0  ;;  %2039 = vmatpush3.bf16.msra.mxu1 %v2136_v4  ;;  %v2788_v14 = vld [vmem:[%s2963_s8] ss:$0 sm:$0xff] }
 0x19e   :  { %2040 = vmatprep.subr.bf16.mxu1 %v2137_v13 }
 0x19f   :  { %v772_v53 = vmax.f32 %v754_v38, 0.0  ;;  %1984 = vmatprep.mubr.bf16.mxu1 %v779_v50 }
 0x1a1   :  { %v780_v33 = vpack.c.bf16 %v772_v53, %v771_v52  ;;  %2041 = vmatpush3.bf16.msra.mxu1 %v2137_v13 }
 0x1a2   :  { %2042 = vmatprep.subr.bf16.mxu1 %v2138_v54 }
 0x1a3   :  { %1985 = vmatmul.mubr.bf16.gmra.mrb[28].mxu1 %v780_v33 }
 0x1a5   :  { %2043 = vmatpush3.bf16.msra.mxu1 %v2138_v54 }
 0x1a6   :  { %2044 = vmatprep.subr.bf16.mxu1 %v2139_v55 }
 0x1a9   :  { %2045 = vmatpush3.bf16.msra.mxu1 %v2139_v55 }
 0x1aa   :  { %2046 = vmatprep.subr.bf16.mxu1 %v2140_v56 }
 0x1ad   :  { %2047 = vmatpush3.bf16.msra.mxu1 %v2140_v56 }
 0x1ae   :  { %2048 = vmatprep.subr.bf16.mxu1 %v2141_v32 }
 0x1b1   :  { %2049 = vmatpush3.bf16.msra.mxu1 %v2141_v32 }
 0x1b2   :  { %2050 = vmatprep.subr.bf16.mxu1 %v2142_v34 }
 0x1b5   :  { %2051 = vmatpush3.bf16.msra.mxu1 %v2142_v34 }
 0x24f   :  { %v1974_v45 = vpop.f32.mrb[16].mxu1 }
 0x250   :  { %v879_v46 = vpop.f32.mrb[17].mxu1 }
 0x251   :  { %v1975_v57 = vpop.f32.mrb[18].mxu1 }
 0x252   :  { %v943_v58 = vpack.c.bf16 %v1975_v57, %v1974_v45  ;;  %v882_v59 = vpop.f32.mrb[19].mxu1 }
 0x253   :  { %v942_v60 = vpack.c.bf16 %v882_v59, %v879_v46 }
 0x255   :  { %1988 = vmatprep.subr.bf16.mxu0 %v942_v60 }
 0x256   :  { %1989 = vmatpush3.bf16.msra.mxu0 %v942_v60 }
 0x257   :  { %1990 = vmatprep.subr.bf16.mxu0 %v943_v58 }
 0x25a   :  { %1991 = vmatpush3.bf16.msra.mxu0 %v943_v58 }
 0x25b   :  { %v1978_v61 = vpop.f32.mrb[20].mxu1 }
 0x25c   :  { %v895_v62 = vpop.f32.mrb[21].mxu1 }
 0x25d   :  { %v1979_v63 = vpop.f32.mrb[22].mxu1 }
 0x25e   :  { %v945_v0 = vpack.c.bf16 %v1979_v63, %v1978_v61  ;;  %v898_v1 = vpop.f32.mrb[23].mxu1 }
 0x25f   :  { %v944_v2 = vpack.c.bf16 %v898_v1, %v895_v62 }
 0x261   :  { %1992 = vmatprep.subr.bf16.mxu0 %v944_v2 }
 0x262   :  { %1993 = vmatpush3.bf16.msra.mxu0 %v944_v2 }
 0x263   :  { %1994 = vmatprep.subr.bf16.mxu0 %v945_v0 }
 0x266   :  { %1995 = vmatpush3.bf16.msra.mxu0 %v945_v0 }
 0x267   :  { %v1982_v3 = vpop.f32.mrb[24].mxu1 }
 0x268   :  { %v911_v49 = vpop.f32.mrb[25].mxu1 }
 0x269   :  { %v1983_v51 = vpop.f32.mrb[26].mxu1 }
 0x26a   :  { %v947_v30 = vpack.c.bf16 %v1983_v51, %v1982_v3  ;;  %v914_v44 = vpop.f32.mrb[27].mxu1 }
 0x26b   :  { %v946_v5 = vpack.c.bf16 %v914_v44, %v911_v49 }
 0x26d   :  { %1996 = vmatprep.subr.bf16.mxu0 %v946_v5 }
 0x26e   :  { %1997 = vmatpush3.bf16.msra.mxu0 %v946_v5 }
 0x26f   :  { %1998 = vmatprep.subr.bf16.mxu0 %v947_v30 }
 0x272   :  { %1999 = vmatpush3.bf16.msra.mxu0 %v947_v30 }
 0x276   :  { %v1986_v6 = vpop.f32.mrb[28].mxu1 }
 0x277   :  { %v927_v7 = vpop.f32.mrb[29].mxu1 }
 0x278   :  { %v1987_v8 = vpop.f32.mrb[30].mxu1 }
 0x279   :  { %v949_v9 = vpack.c.bf16 %v1987_v8, %v1986_v6  ;;  %v930_v10 = vpop.f32.mrb[31].mxu1 }
 0x27a   :  { %v948_v11 = vpack.c.bf16 %v930_v10, %v927_v7 }
 0x27c   :  { %2000 = vmatprep.subr.bf16.mxu0 %v948_v11 }
 0x27d   :  { %2001 = vmatpush3.bf16.msra.mxu0 %v948_v11 }
 0x27e   :  { %2002 = vmatprep.subr.bf16.mxu0 %v949_v9 }
 0x281   :  { %2003 = vmatpush3.bf16.msra.mxu0 %v949_v9 }
 0x284   :  { %2005 = vmatmul.mubr.bf16.vlgmr.msra.gmra.mrb[32].mxu0 %v2120_v15 }
 0x285   :  { %2008 = vmatprep.mubr.bf16.mxu0 %v2121_v16 }
 0x28c   :  { %2009 = vmatmul.mubr.bf16.gmra.mrb[36].mxu0 %v2122_v17 }
 0x28d   :  { %2012 = vmatprep.mubr.bf16.mxu0 %v2123_v18 }
 0x294   :  { %2013 = vmatmul.mubr.bf16.gmra.mrb[40].mxu0 %v2124_v19 }
 0x295   :  { %2016 = vmatprep.mubr.bf16.mxu0 %v2125_v21 }
 0x29c   :  { %2017 = vmatmul.mubr.bf16.gmra.mrb[44].mxu0 %v2126_v22 }
 0x29d   :  { %2020 = vmatprep.mubr.bf16.mxu0 %v2127_v23 }
 0x2a4   :  { %2021 = vmatmul.mubr.bf16.gmra.mrb[48].mxu0 %v2128_v24 }
 0x2a5   :  { %2024 = vmatprep.mubr.bf16.mxu0 %v2129_v25 }
 0x2ac   :  { %2025 = vmatmul.mubr.bf16.gmra.mrb[52].mxu0 %v2130_v26 }
 0x2ad   :  { %2028 = vmatprep.mubr.bf16.mxu0 %v2131_v27 }
 0x2b4   :  { %2029 = vmatmul.mubr.bf16.gmra.mrb[56].mxu0 %v2132_v28 }
 0x2b5   :  { %2032 = vmatprep.mubr.bf16.mxu0 %v2133_v29 }
 0x2bc   :  { %2033 = vmatmul.mubr.bf16.gmra.mrb[60].mxu0 %v2134_v31 }
 0x357   :  { %v2006_v35 = vpop.f32.mrb[32].mxu0 }
 0x358   :  { %v1128_v36 = vadd.f32 %v2006_v35, %v2788_v14  ;;  %v1119_v37 = vpop.f32.mrb[33].mxu0 }
 0x359   :  { %v1120_v39 = vadd.f32 %v2788_v14, %v1119_v37  ;;  %v2007_v40 = vpop.f32.mrb[34].mxu0 }
 0x35a   :  { %v1131_v41 = vadd.f32 %v2007_v40, %v2788_v14  ;;  %v1122_v42 = vpop.f32.mrb[35].mxu0  ;;  %v1248_v47 = vmax.f32 %v1128_v36, 0.0 }
 0x35b   :  { %v1123_v43 = vadd.f32 %v2788_v14, %v1122_v42  ;;  %v1246_v38 = vmax.f32 %v1120_v39, 0.0 }
 0x35c   :  { %v1249_v48 = vmax.f32 %v1131_v41, 0.0 }
 0x35d   :  { %v1247_v50 = vmax.f32 %v1123_v43, 0.0 }
 0x35e   :  { %v1279_v52 = vpack.c.bf16 %v1249_v48, %v1248_v47 }
 0x35f   :  { %v1278_v53 = vpack.c.bf16 %v1247_v50, %v1246_v38  ;;  %v2010_v33 = vpop.f32.mrb[36].mxu0 }
 0x360   :  { %v1144_v20 = vadd.f32 %v2010_v33, %v2788_v14  ;;  %v1135_v12 = vpop.f32.mrb[37].mxu0 }
 0x361   :  { %v1136_v4 = vadd.f32 %v2788_v14, %v1135_v12  ;;  %v2011_v13 = vpop.f32.mrb[38].mxu0  ;;  %2052 = vmatprep.mubr.bf16.mxu1 %v1278_v53 }
 0x362   :  { %v1147_v54 = vadd.f32 %v2011_v13, %v2788_v14  ;;  %v1138_v55 = vpop.f32.mrb[39].mxu0  ;;  %2053 = vmatmul.mubr.bf16.vlgmr.msra.gmra.mrb[32].mxu1 %v1279_v52  ;;  %v1252_v45 = vmax.f32 %v1144_v20, 0.0 }
 0x363   :  { %v1139_v56 = vadd.f32 %v2788_v14, %v1138_v55  ;;  %v1250_v57 = vmax.f32 %v1136_v4, 0.0 }
 0x364   :  { %v1253_v46 = vmax.f32 %v1147_v54, 0.0 }
 0x365   :  { %v1251_v58 = vmax.f32 %v1139_v56, 0.0 }
 0x366   :  { %v1281_v59 = vpack.c.bf16 %v1253_v46, %v1252_v45 }
 0x367   :  { %v1280_v60 = vpack.c.bf16 %v1251_v58, %v1250_v57  ;;  %v2014_v61 = vpop.f32.mrb[40].mxu0 }
 0x368   :  { %v1160_v62 = vadd.f32 %v2014_v61, %v2788_v14  ;;  %v1151_v63 = vpop.f32.mrb[41].mxu0 }
 0x369   :  { %v1152_v0 = vadd.f32 %v2788_v14, %v1151_v63  ;;  %v2015_v1 = vpop.f32.mrb[42].mxu0  ;;  %2056 = vmatprep.mubr.bf16.mxu1 %v1280_v60 }
 0x36a   :  { %v1163_v2 = vadd.f32 %v2015_v1, %v2788_v14  ;;  %v1154_v3 = vpop.f32.mrb[43].mxu0  ;;  %2057 = vmatmul.mubr.bf16.gmra.mrb[36].mxu1 %v1281_v59  ;;  %v1256_v51 = vmax.f32 %v1160_v62, 0.0 }
 0x36b   :  { %v1155_v49 = vadd.f32 %v2788_v14, %v1154_v3  ;;  %v1254_v44 = vmax.f32 %v1152_v0, 0.0 }
 0x36c   :  { %v1257_v30 = vmax.f32 %v1163_v2, 0.0 }
 0x36d   :  { %v1255_v5 = vmax.f32 %v1155_v49, 0.0 }
 0x36e   :  { %v1283_v6 = vpack.c.bf16 %v1257_v30, %v1256_v51 }
 0x36f   :  { %v1282_v7 = vpack.c.bf16 %v1255_v5, %v1254_v44  ;;  %v2018_v8 = vpop.f32.mrb[44].mxu0 }
 0x370   :  { %v1176_v9 = vadd.f32 %v2018_v8, %v2788_v14  ;;  %v1167_v10 = vpop.f32.mrb[45].mxu0 }
 0x371   :  { %v1168_v11 = vadd.f32 %v2788_v14, %v1167_v10  ;;  %v2019_v15 = vpop.f32.mrb[46].mxu0  ;;  %2060 = vmatprep.mubr.bf16.mxu1 %v1282_v7 }
 0x372   :  { %v1179_v16 = vadd.f32 %v2019_v15, %v2788_v14  ;;  %v1170_v17 = vpop.f32.mrb[47].mxu0  ;;  %2061 = vmatmul.mubr.bf16.gmra.mrb[40].mxu1 %v1283_v6  ;;  %v1260_v19 = vmax.f32 %v1176_v9, 0.0 }
 0x373   :  { %v1171_v18 = vadd.f32 %v2788_v14, %v1170_v17  ;;  %v1258_v22 = vmax.f32 %v1168_v11, 0.0 }
 0x374   :  { %v1261_v21 = vmax.f32 %v1179_v16, 0.0 }
 0x375   :  { %v1259_v23 = vmax.f32 %v1171_v18, 0.0  ;;  %v2825_v18 = vld [vmem:[%s2964_s9] ss:$0 sm:$0xff] }
 0x376   :  { %v1285_v24 = vpack.c.bf16 %v1261_v21, %v1260_v19 }
 0x377   :  { %v1284_v25 = vpack.c.bf16 %v1259_v23, %v1258_v22  ;;  %v2022_v26 = vpop.f32.mrb[48].mxu0 }
 0x378   :  { %v1192_v27 = vadd.f32 %v2022_v26, %v2788_v14  ;;  %v1183_v28 = vpop.f32.mrb[49].mxu0 }
 0x379   :  { %v1184_v29 = vadd.f32 %v2788_v14, %v1183_v28  ;;  %v2023_v31 = vpop.f32.mrb[50].mxu0  ;;  %2064 = vmatprep.mubr.bf16.mxu1 %v1284_v25 }
 0x37a   :  { %v1195_v32 = vadd.f32 %v2023_v31, %v2788_v14  ;;  %v1186_v34 = vpop.f32.mrb[51].mxu0  ;;  %2065 = vmatmul.mubr.bf16.gmra.mrb[44].mxu1 %v1285_v24  ;;  %v1264_v36 = vmax.f32 %v1192_v27, 0.0 }
 0x37b   :  { %v1187_v35 = vadd.f32 %v2788_v14, %v1186_v34  ;;  %v1262_v39 = vmax.f32 %v1184_v29, 0.0 }
 0x37c   :  { %v1265_v37 = vmax.f32 %v1195_v32, 0.0 }
 0x37d   :  { %v1263_v40 = vmax.f32 %v1187_v35, 0.0 }
 0x37e   :  { %v1287_v41 = vpack.c.bf16 %v1265_v37, %v1264_v36 }
 0x37f   :  { %v1286_v42 = vpack.c.bf16 %v1263_v40, %v1262_v39  ;;  %v2026_v43 = vpop.f32.mrb[52].mxu0 }
 0x380   :  { %v1208_v47 = vadd.f32 %v2026_v43, %v2788_v14  ;;  %v1199_v48 = vpop.f32.mrb[53].mxu0 }
 0x381   :  { %v1200_v38 = vadd.f32 %v2788_v14, %v1199_v48  ;;  %v2027_v50 = vpop.f32.mrb[54].mxu0  ;;  %2068 = vmatprep.mubr.bf16.mxu1 %v1286_v42 }
 0x382   :  { %v1211_v52 = vadd.f32 %v2027_v50, %v2788_v14  ;;  %v1202_v53 = vpop.f32.mrb[55].mxu0  ;;  %2069 = vmatmul.mubr.bf16.gmra.mrb[48].mxu1 %v1287_v41  ;;  %v1268_v20 = vmax.f32 %v1208_v47, 0.0 }
 0x383   :  { %v1203_v33 = vadd.f32 %v2788_v14, %v1202_v53  ;;  %v1266_v4 = vmax.f32 %v1200_v38, 0.0 }
 0x384   :  { %v1269_v12 = vmax.f32 %v1211_v52, 0.0 }
 0x385   :  { %v1267_v13 = vmax.f32 %v1203_v33, 0.0 }
 0x386   :  { %v1289_v54 = vpack.c.bf16 %v1269_v12, %v1268_v20 }
 0x387   :  { %v1288_v55 = vpack.c.bf16 %v1267_v13, %v1266_v4  ;;  %v2030_v56 = vpop.f32.mrb[56].mxu0 }
 0x388   :  { %v1224_v45 = vadd.f32 %v2030_v56, %v2788_v14  ;;  %v1215_v46 = vpop.f32.mrb[57].mxu0 }
 0x389   :  { %v1216_v57 = vadd.f32 %v2788_v14, %v1215_v46  ;;  %v2031_v58 = vpop.f32.mrb[58].mxu0  ;;  %2072 = vmatprep.mubr.bf16.mxu1 %v1288_v55 }
 0x38a   :  { %v1227_v59 = vadd.f32 %v2031_v58, %v2788_v14  ;;  %v1218_v60 = vpop.f32.mrb[59].mxu0  ;;  %2073 = vmatmul.mubr.bf16.gmra.mrb[52].mxu1 %v1289_v54  ;;  %v1272_v62 = vmax.f32 %v1224_v45, 0.0 }
 0x38b   :  { %v1219_v61 = vadd.f32 %v2788_v14, %v1218_v60  ;;  %v1270_v0 = vmax.f32 %v1216_v57, 0.0 }
 0x38c   :  { %v1273_v63 = vmax.f32 %v1227_v59, 0.0 }
 0x38d   :  { %v1271_v1 = vmax.f32 %v1219_v61, 0.0 }
 0x38e   :  { %v1291_v2 = vpack.c.bf16 %v1273_v63, %v1272_v62 }
 0x38f   :  { %v1290_v3 = vpack.c.bf16 %v1271_v1, %v1270_v0  ;;  %v2034_v49 = vpop.f32.mrb[60].mxu0 }
 0x390   :  { %v1240_v51 = vadd.f32 %v2034_v49, %v2788_v14  ;;  %v1231_v30 = vpop.f32.mrb[61].mxu0 }
 0x391   :  { %v1232_v44 = vadd.f32 %v2788_v14, %v1231_v30  ;;  %v2035_v5 = vpop.f32.mrb[62].mxu0  ;;  %2076 = vmatprep.mubr.bf16.mxu1 %v1290_v3 }
 0x392   :  { %v1243_v6 = vadd.f32 %v2035_v5, %v2788_v14  ;;  %v1234_v7 = vpop.f32.mrb[63].mxu0  ;;  %2077 = vmatmul.mubr.bf16.gmra.mrb[56].mxu1 %v1291_v2  ;;  %v1276_v9 = vmax.f32 %v1240_v51, 0.0 }
 0x393   :  { %v1235_v8 = vadd.f32 %v2788_v14, %v1234_v7  ;;  %v1274_v11 = vmax.f32 %v1232_v44, 0.0 }
 0x394   :  { %v1277_v10 = vmax.f32 %v1243_v6, 0.0 }
 0x395   :  { %v1275_v15 = vmax.f32 %v1235_v8, 0.0 }
 0x396   :  { %v1293_v16 = vpack.c.bf16 %v1277_v10, %v1276_v9 }
 0x397   :  { %v1292_v17 = vpack.c.bf16 %v1275_v15, %v1274_v11 }
 0x399   :  { %2080 = vmatprep.mubr.bf16.mxu1 %v1292_v17 }
 0x39a   :  { %2081 = vmatmul.mubr.bf16.gmra.mrb[60].mxu1 %v1293_v16 }
 0x435   :  { %v2054_v19 = vpop.f32.mrb[32].mxu1 }
 0x436   :  { %v1408_v21 = vadd.f32 %v2054_v19, %v2825_v18  ;;  %v1399_v22 = vpop.f32.mrb[33].mxu1 }
 0x437   :  { %v1400_v23 = vadd.f32 %v2825_v18, %v1399_v22  ;;  %v2055_v14 = vpop.f32.mrb[34].mxu1 }
 0x438   :  { %v1528_v24 = vsub.f32 0.0, %v1408_v21  ;;  %v1411_v25 = vadd.f32 %v2055_v14, %v2825_v18  ;;  %v1402_v26 = vpop.f32.mrb[35].mxu1 }
 0x439   :  { %v1526_v27 = vsub.f32 0.0, %v1400_v23  ;;  %v1403_v28 = vadd.f32 %v2825_v18, %v1402_v26 }
 0x43a   :  { %v1562_v29 = vmul.f32 1.442695, %v1528_v24  ;;  %v1529_v31 = vsub.f32 0.0, %v1411_v25 }
 0x43b   :  { %v1558_v32 = vmul.f32 1.442695, %v1526_v27  ;;  %v1527_v34 = vsub.f32 0.0, %v1403_v28 }
 0x43c   :  { %2143 = vpow2.f32 %v1562_v29  ;;  %v1564_v35 = vmul.f32 1.442695, %v1529_v31 }
 0x43d   :  { %2145 = vpow2.f32 %v1558_v32  ;;  %v1560_v36 = vmul.f32 1.442695, %v1527_v34  ;;  %v2058_v37 = vpop.f32.mrb[36].mxu1 }
 0x43e   :  { %2147 = vpow2.f32 %v1564_v35  ;;  %v1424_v39 = vadd.f32 %v2058_v37, %v2825_v18  ;;  %v1415_v40 = vpop.f32.mrb[37].mxu1 }
 0x43f   :  { %2149 = vpow2.f32 %v1560_v36  ;;  %v1416_v41 = vadd.f32 %v2825_v18, %v1415_v40  ;;  %v2059_v42 = vpop.f32.mrb[38].mxu1 }
 0x440   :  { %v1532_v43 = vsub.f32 0.0, %v1424_v39  ;;  %v1427_v47 = vadd.f32 %v2059_v42, %v2825_v18  ;;  %v1418_v48 = vpop.f32.mrb[39].mxu1 }
 0x441   :  { %v1530_v38 = vsub.f32 0.0, %v1416_v41  ;;  %v1419_v50 = vadd.f32 %v2825_v18, %v1418_v48 }
 0x442   :  { %v1570_v52 = vmul.f32 1.442695, %v1532_v43  ;;  %v1533_v53 = vsub.f32 0.0, %v1427_v47 }
 0x443   :  { %v1566_v33 = vmul.f32 1.442695, %v1530_v38  ;;  %v1531_v20 = vsub.f32 0.0, %v1419_v50 }
 0x444   :  { %2151 = vpow2.f32 %v1570_v52  ;;  %v1572_v12 = vmul.f32 1.442695, %v1533_v53 }
 0x445   :  { %2153 = vpow2.f32 %v1566_v33  ;;  %v1568_v4 = vmul.f32 1.442695, %v1531_v20  ;;  %v2062_v13 = vpop.f32.mrb[40].mxu1 }
 0x446   :  { %v2144_v54 = vpop.eup %2143  ;;  %2155 = vpow2.f32 %v1572_v12  ;;  %v1440_v55 = vadd.f32 %v2062_v13, %v2825_v18  ;;  %v1431_v56 = vpop.f32.mrb[41].mxu1 }
 0x447   :  { %v2146_v45 = vpop.eup %2145  ;;  %v1624_v46 = vadd.f32 1.0, %v2144_v54  ;;  %2157 = vpow2.f32 %v1568_v4  ;;  %v1432_v57 = vadd.f32 %v2825_v18, %v1431_v56  ;;  %v2063_v58 = vpop.f32.mrb[42].mxu1 }
 0x448   :  { %v2148_v59 = vpop.eup %2147  ;;  %v1622_v60 = vadd.f32 1.0, %v2146_v45  ;;  %v1536_v61 = vsub.f32 0.0, %v1440_v55  ;;  %v1443_v62 = vadd.f32 %v2063_v58, %v2825_v18  ;;  %v1434_v63 = vpop.f32.mrb[43].mxu1 }
 0x449   :  { %v2150_v0 = vpop.eup %2149  ;;  %2159 = vrcp.f32 %v1624_v46  ;;  %v1625_v1 = vadd.f32 1.0, %v2148_v59  ;;  %v1534_v2 = vsub.f32 0.0, %v1432_v57  ;;  %v1435_v3 = vadd.f32 %v2825_v18, %v1434_v63 }
 0x44a   :  { %2161 = vrcp.f32 %v1622_v60  ;;  %v1623_v49 = vadd.f32 1.0, %v2150_v0  ;;  %v1578_v51 = vmul.f32 1.442695, %v1536_v61  ;;  %v1537_v30 = vsub.f32 0.0, %v1443_v62 }
 0x44b   :  { %2163 = vrcp.f32 %v1625_v1  ;;  %v1574_v44 = vmul.f32 1.442695, %v1534_v2  ;;  %v1535_v5 = vsub.f32 0.0, %v1435_v3 }
 0x44c   :  { %2165 = vrcp.f32 %v1623_v49  ;;  %v1580_v6 = vmul.f32 1.442695, %v1537_v30 }
 0x44d   :  { %2167 = vpow2.f32 %v1578_v51  ;;  %v1576_v7 = vmul.f32 1.442695, %v1535_v5  ;;  %v2066_v8 = vpop.f32.mrb[44].mxu1 }
 0x44e   :  { %v2152_v9 = vpop.eup %2151  ;;  %2169 = vpow2.f32 %v1574_v44  ;;  %v1456_v10 = vadd.f32 %v2066_v8, %v2825_v18  ;;  %v1447_v11 = vpop.f32.mrb[45].mxu1 }
 0x44f   :  { %v2154_v15 = vpop.eup %2153  ;;  %v1628_v16 = vadd.f32 1.0, %v2152_v9  ;;  %2171 = vpow2.f32 %v1580_v6  ;;  %v1448_v17 = vadd.f32 %v2825_v18, %v1447_v11  ;;  %v2067_v19 = vpop.f32.mrb[46].mxu1 }
 0x450   :  { %v2156_v21 = vpop.eup %2155  ;;  %v1626_v22 = vadd.f32 1.0, %v2154_v15  ;;  %2173 = vpow2.f32 %v1576_v7  ;;  %v1540_v23 = vsub.f32 0.0, %v1456_v10  ;;  %v1459_v14 = vadd.f32 %v2067_v19, %v2825_v18  ;;  %v1450_v24 = vpop.f32.mrb[47].mxu1 }
 0x451   :  { %v2158_v25 = vpop.eup %2157  ;;  %2175 = vrcp.f32 %v1628_v16  ;;  %v1629_v26 = vadd.f32 1.0, %v2156_v21  ;;  %v1538_v27 = vsub.f32 0.0, %v1448_v17  ;;  %v1451_v28 = vadd.f32 %v2825_v18, %v1450_v24 }
 0x452   :  { %2177 = vrcp.f32 %v1626_v22  ;;  %v1627_v29 = vadd.f32 1.0, %v2158_v25  ;;  %v1586_v31 = vmul.f32 1.442695, %v1540_v23  ;;  %v1541_v32 = vsub.f32 0.0, %v1459_v14 }
 0x453   :  { %v2160_v34 = vpop.eup %2159  ;;  %2179 = vrcp.f32 %v1629_v26  ;;  %v1582_v35 = vmul.f32 1.442695, %v1538_v27  ;;  %v1539_v36 = vsub.f32 0.0, %v1451_v28 }
 0x454   :  { %v2162_v37 = vpop.eup %2161  ;;  %1688 = vst [vmem:[%s2965_s10 + $0x10] sm:$0xff] %v2160_v34  ;;  %2181 = vrcp.f32 %v1627_v29  ;;  %v1588_v39 = vmul.f32 1.442695, %v1541_v32 }
 0x455   :  { %v2164_v40 = vpop.eup %2163  ;;  %1686 = vst [vmem:[%s2965_s10] sm:$0xff] %v2162_v37  ;;  %2183 = vpow2.f32 %v1586_v31  ;;  %v1584_v41 = vmul.f32 1.442695, %v1539_v36  ;;  %v2070_v42 = vpop.f32.mrb[48].mxu1 }
 0x456   :  { %v2166_v43 = vpop.eup %2165  ;;  %1689 = vst [vmem:[%s2965_s10 + $0x18] sm:$0xff] %v2164_v40  ;;  %2185 = vpow2.f32 %v1582_v35  ;;  %v1472_v47 = vadd.f32 %v2070_v42, %v2825_v18  ;;  %v1463_v48 = vpop.f32.mrb[49].mxu1 }
 0x457   :  { %v2168_v38 = vpop.eup %2167  ;;  %1687 = vst [vmem:[%s2965_s10 + $0x8] sm:$0xff] %v2166_v43  ;;  %2187 = vpow2.f32 %v1588_v39  ;;  %v1464_v50 = vadd.f32 %v2825_v18, %v1463_v48  ;;  %v2071_v52 = vpop.f32.mrb[50].mxu1 }
 0x458   :  { %v2170_v53 = vpop.eup %2169  ;;  %v1632_v33 = vadd.f32 1.0, %v2168_v38  ;;  %2189 = vpow2.f32 %v1584_v41  ;;  %v1544_v20 = vsub.f32 0.0, %v1472_v47  ;;  %v1475_v12 = vadd.f32 %v2071_v52, %v2825_v18  ;;  %v1466_v4 = vpop.f32.mrb[51].mxu1 }
 0x459   :  { %v2172_v13 = vpop.eup %2171  ;;  %v1630_v54 = vadd.f32 1.0, %v2170_v53  ;;  %v1542_v55 = vsub.f32 0.0, %v1464_v50  ;;  %v1467_v56 = vadd.f32 %v2825_v18, %v1466_v4 }
 0x45a   :  { %v2174_v45 = vpop.eup %2173  ;;  %2191 = vrcp.f32 %v1632_v33  ;;  %v1633_v46 = vadd.f32 1.0, %v2172_v13  ;;  %v1594_v57 = vmul.f32 1.442695, %v1544_v20  ;;  %v1545_v58 = vsub.f32 0.0, %v1475_v12 }
 0x45b   :  { %v2176_v59 = vpop.eup %2175  ;;  %2193 = vrcp.f32 %v1630_v54  ;;  %v1631_v60 = vadd.f32 1.0, %v2174_v45  ;;  %v1590_v61 = vmul.f32 1.442695, %v1542_v55  ;;  %v1543_v62 = vsub.f32 0.0, %v1467_v56 }
 0x45c   :  { %v2178_v63 = vpop.eup %2177  ;;  %1692 = vst [vmem:[%s2965_s10 + $0x30] sm:$0xff] %v2176_v59  ;;  %2195 = vrcp.f32 %v1633_v46  ;;  %v1596_v0 = vmul.f32 1.442695, %v1545_v58 }
 0x45d   :  { %v2180_v1 = vpop.eup %2179  ;;  %1690 = vst [vmem:[%s2965_s10 + $0x20] sm:$0xff] %v2178_v63  ;;  %2197 = vrcp.f32 %v1631_v60  ;;  %v1592_v2 = vmul.f32 1.442695, %v1543_v62  ;;  %v2074_v3 = vpop.f32.mrb[52].mxu1 }
 0x45e   :  { %v2182_v49 = vpop.eup %2181  ;;  %1693 = vst [vmem:[%s2965_s10 + $0x38] sm:$0xff] %v2180_v1  ;;  %2199 = vpow2.f32 %v1594_v57  ;;  %v1488_v51 = vadd.f32 %v2074_v3, %v2825_v18  ;;  %v1479_v30 = vpop.f32.mrb[53].mxu1 }
 0x45f   :  { %v2184_v44 = vpop.eup %2183  ;;  %1691 = vst [vmem:[%s2965_s10 + $0x28] sm:$0xff] %v2182_v49  ;;  %2201 = vpow2.f32 %v1590_v61  ;;  %v1480_v5 = vadd.f32 %v2825_v18, %v1479_v30  ;;  %v2075_v6 = vpop.f32.mrb[54].mxu1 }
 0x460   :  { %v2186_v7 = vpop.eup %2185  ;;  %v1636_v8 = vadd.f32 1.0, %v2184_v44  ;;  %2203 = vpow2.f32 %v1596_v0  ;;  %v1548_v9 = vsub.f32 0.0, %v1488_v51  ;;  %v1491_v10 = vadd.f32 %v2075_v6, %v2825_v18  ;;  %v1482_v11 = vpop.f32.mrb[55].mxu1 }
 0x461   :  { %v2188_v15 = vpop.eup %2187  ;;  %v1634_v16 = vadd.f32 1.0, %v2186_v7  ;;  %2205 = vpow2.f32 %v1592_v2  ;;  %v1546_v17 = vsub.f32 0.0, %v1480_v5  ;;  %v1483_v19 = vadd.f32 %v2825_v18, %v1482_v11 }
 0x462   :  { %v2190_v21 = vpop.eup %2189  ;;  %2207 = vrcp.f32 %v1636_v8  ;;  %v1637_v22 = vadd.f32 1.0, %v2188_v15  ;;  %v1602_v23 = vmul.f32 1.442695, %v1548_v9  ;;  %v1549_v14 = vsub.f32 0.0, %v1491_v10 }
 0x463   :  { %2209 = vrcp.f32 %v1634_v16  ;;  %v1635_v24 = vadd.f32 1.0, %v2190_v21  ;;  %v1598_v25 = vmul.f32 1.442695, %v1546_v17  ;;  %v1547_v26 = vsub.f32 0.0, %v1483_v19 }
 0x464   :  { %v2192_v27 = vpop.eup %2191  ;;  %2211 = vrcp.f32 %v1637_v22  ;;  %v1604_v28 = vmul.f32 1.442695, %v1549_v14 }
 0x465   :  { %v2194_v29 = vpop.eup %2193  ;;  %1696 = vst [vmem:[%s2965_s10 + $0x50] sm:$0xff] %v2192_v27  ;;  %2213 = vrcp.f32 %v1635_v24  ;;  %v1600_v31 = vmul.f32 1.442695, %v1547_v26  ;;  %v2078_v32 = vpop.f32.mrb[56].mxu1 }
 0x466   :  { %v2196_v34 = vpop.eup %2195  ;;  %1694 = vst [vmem:[%s2965_s10 + $0x40] sm:$0xff] %v2194_v29  ;;  %2215 = vpow2.f32 %v1602_v23  ;;  %v1504_v35 = vadd.f32 %v2078_v32, %v2825_v18  ;;  %v1495_v36 = vpop.f32.mrb[57].mxu1 }
 0x467   :  { %v2198_v37 = vpop.eup %2197  ;;  %1697 = vst [vmem:[%s2965_s10 + $0x58] sm:$0xff] %v2196_v34  ;;  %2217 = vpow2.f32 %v1598_v25  ;;  %v1496_v39 = vadd.f32 %v2825_v18, %v1495_v36  ;;  %v2079_v40 = vpop.f32.mrb[58].mxu1 }
 0x468   :  { %v2200_v41 = vpop.eup %2199  ;;  %1695 = vst [vmem:[%s2965_s10 + $0x48] sm:$0xff] %v2198_v37  ;;  %2219 = vpow2.f32 %v1604_v28  ;;  %v1552_v42 = vsub.f32 0.0, %v1504_v35  ;;  %v1507_v43 = vadd.f32 %v2079_v40, %v2825_v18  ;;  %v1498_v47 = vpop.f32.mrb[59].mxu1 }
 0x469   :  { %v2202_v48 = vpop.eup %2201  ;;  %v1640_v38 = vadd.f32 1.0, %v2200_v41  ;;  %2221 = vpow2.f32 %v1600_v31  ;;  %v1550_v50 = vsub.f32 0.0, %v1496_v39  ;;  %v1499_v52 = vadd.f32 %v2825_v18, %v1498_v47 }
 0x46a   :  { %v2204_v53 = vpop.eup %2203  ;;  %v1638_v33 = vadd.f32 1.0, %v2202_v48  ;;  %v1553_v20 = vsub.f32 0.0, %v1507_v43  ;;  %v1610_v13 = vmul.f32 1.442695, %v1552_v42 }
 0x46b   :  { %v2206_v12 = vpop.eup %2205  ;;  %2223 = vrcp.f32 %v1640_v38  ;;  %v1641_v4 = vadd.f32 1.0, %v2204_v53  ;;  %v1551_v54 = vsub.f32 0.0, %v1499_v52  ;;  %v1606_v45 = vmul.f32 1.442695, %v1550_v50 }
 0x46c   :  { %v2208_v55 = vpop.eup %2207  ;;  %2225 = vrcp.f32 %v1638_v33  ;;  %v1639_v56 = vadd.f32 1.0, %v2206_v12  ;;  %v1612_v57 = vmul.f32 1.442695, %v1553_v20 }
 0x46d   :  { %v2210_v46 = vpop.eup %2209  ;;  %1700 = vst [vmem:[%s2965_s10 + $0x70] sm:$0xff] %v2208_v55  ;;  %2227 = vrcp.f32 %v1641_v4  ;;  %v2082_v58 = vpop.f32.mrb[60].mxu1  ;;  %v1608_v60 = vmul.f32 1.442695, %v1551_v54 }
 0x46e   :  { %v2212_v59 = vpop.eup %2211  ;;  %1698 = vst [vmem:[%s2965_s10 + $0x60] sm:$0xff] %v2210_v46  ;;  %2229 = vrcp.f32 %v1639_v56  ;;  %v1520_v61 = vadd.f32 %v2082_v58, %v2825_v18  ;;  %v1511_v62 = vpop.f32.mrb[61].mxu1 }
 0x46f   :  { %v2214_v63 = vpop.eup %2213  ;;  %1701 = vst [vmem:[%s2965_s10 + $0x78] sm:$0xff] %v2212_v59  ;;  %2231 = vpow2.f32 %v1610_v13  ;;  %v1512_v0 = vadd.f32 %v2825_v18, %v1511_v62  ;;  %v2083_v1 = vpop.f32.mrb[62].mxu1 }
 0x470   :  { %v2216_v2 = vpop.eup %2215  ;;  %1699 = vst [vmem:[%s2965_s10 + $0x68] sm:$0xff] %v2214_v63  ;;  %2233 = vpow2.f32 %v1606_v45  ;;  %v1556_v3 = vsub.f32 0.0, %v1520_v61  ;;  %v1523_v49 = vadd.f32 %v2083_v1, %v2825_v18  ;;  %v1514_v51 = vpop.f32.mrb[63].mxu1 }
 0x471   :  { %v2218_v30 = vpop.eup %2217  ;;  %v1644_v44 = vadd.f32 1.0, %v2216_v2  ;;  %2235 = vpow2.f32 %v1612_v57  ;;  %v1554_v5 = vsub.f32 0.0, %v1512_v0  ;;  %v1515_v6 = vadd.f32 %v2825_v18, %v1514_v51 }
 0x472   :  { %v2220_v7 = vpop.eup %2219  ;;  %v1642_v8 = vadd.f32 1.0, %v2218_v30  ;;  %2237 = vpow2.f32 %v1608_v60  ;;  %v1557_v9 = vsub.f32 0.0, %v1523_v49  ;;  %v1618_v15 = vmul.f32 1.442695, %v1556_v3 }
 0x473   :  { %v2222_v10 = vpop.eup %2221  ;;  %2239 = vrcp.f32 %v1644_v44  ;;  %v1645_v11 = vadd.f32 1.0, %v2220_v7  ;;  %v1555_v16 = vsub.f32 0.0, %v1515_v6  ;;  %v1614_v19 = vmul.f32 1.442695, %v1554_v5 }
 0x474   :  { %2241 = vrcp.f32 %v1642_v8  ;;  %v1643_v17 = vadd.f32 1.0, %v2222_v10  ;;  %v1620_v22 = vmul.f32 1.442695, %v1557_v9 }
 0x475   :  { %v2224_v21 = vpop.eup %2223  ;;  %2243 = vrcp.f32 %v1645_v11  ;;  %v1616_v18 = vmul.f32 1.442695, %v1555_v16 }
 0x476   :  { %v2226_v23 = vpop.eup %2225  ;;  %1704 = vst [vmem:[%s2965_s10 + $0x90] sm:$0xff] %v2224_v21  ;;  %2245 = vrcp.f32 %v1643_v17 }
 0x477   :  { %v2228_v14 = vpop.eup %2227  ;;  %1702 = vst [vmem:[%s2965_s10 + $0x80] sm:$0xff] %v2226_v23  ;;  %2247 = vpow2.f32 %v1618_v15 }
 0x478   :  { %v2230_v24 = vpop.eup %2229  ;;  %1705 = vst [vmem:[%s2965_s10 + $0x98] sm:$0xff] %v2228_v14  ;;  %2249 = vpow2.f32 %v1614_v19 }
 0x479   :  { %v2232_v25 = vpop.eup %2231  ;;  %1703 = vst [vmem:[%s2965_s10 + $0x88] sm:$0xff] %v2230_v24  ;;  %2251 = vpow2.f32 %v1620_v22 }
 0x47a   :  { %v2234_v26 = vpop.eup %2233  ;;  %v1648_v27 = vadd.f32 1.0, %v2232_v25  ;;  %2253 = vpow2.f32 %v1616_v18 }
 0x47b   :  { %v2236_v28 = vpop.eup %2235  ;;  %v1646_v29 = vadd.f32 1.0, %v2234_v26 }
 0x47c   :  { %v2238_v31 = vpop.eup %2237  ;;  %2255 = vrcp.f32 %v1648_v27  ;;  %v1649_v32 = vadd.f32 1.0, %v2236_v28 }
 0x47d   :  { %v2240_v34 = vpop.eup %2239  ;;  %2257 = vrcp.f32 %v1646_v29  ;;  %v1647_v35 = vadd.f32 1.0, %v2238_v31 }
 0x47e   :  { %v2242_v36 = vpop.eup %2241  ;;  %1708 = vst [vmem:[%s2965_s10 + $0xb0] sm:$0xff] %v2240_v34  ;;  %2259 = vrcp.f32 %v1649_v32 }
 0x47f   :  { %v2244_v37 = vpop.eup %2243  ;;  %1706 = vst [vmem:[%s2965_s10 + $0xa0] sm:$0xff] %v2242_v36  ;;  %2261 = vrcp.f32 %v1647_v35 }
 0x480   :  { %v2246_v39 = vpop.eup %2245  ;;  %1709 = vst [vmem:[%s2965_s10 + $0xb8] sm:$0xff] %v2244_v37 }
 0x481   :  { %v2248_v40 = vpop.eup %2247  ;;  %1707 = vst [vmem:[%s2965_s10 + $0xa8] sm:$0xff] %v2246_v39 }
 0x482   :  { %v2250_v41 = vpop.eup %2249  ;;  %v1652_v42 = vadd.f32 1.0, %v2248_v40 }
 0x483   :  { %v2252_v43 = vpop.eup %2251  ;;  %v1650_v47 = vadd.f32 1.0, %v2250_v41 }
 0x484   :  { %v2254_v48 = vpop.eup %2253  ;;  %2263 = vrcp.f32 %v1652_v42  ;;  %v1653_v38 = vadd.f32 1.0, %v2252_v43 }
 0x485   :  { %2265 = vrcp.f32 %v1650_v47  ;;  %v1651_v50 = vadd.f32 1.0, %v2254_v48 }
 0x486   :  { %v2256_v52 = vpop.eup %2255  ;;  %2267 = vrcp.f32 %v1653_v38 }
 0x487   :  { %v2258_v53 = vpop.eup %2257  ;;  %1712 = vst [vmem:[%s2965_s10 + $0xd0] sm:$0xff] %v2256_v52  ;;  %2269 = vrcp.f32 %v1651_v50 }
 0x488   :  { %v2260_v33 = vpop.eup %2259  ;;  %1710 = vst [vmem:[%s2965_s10 + $0xc0] sm:$0xff] %v2258_v53 }
 0x489   :  { %v2262_v20 = vpop.eup %2261  ;;  %1713 = vst [vmem:[%s2965_s10 + $0xd8] sm:$0xff] %v2260_v33 }
 0x48a   :  { %1711 = vst [vmem:[%s2965_s10 + $0xc8] sm:$0xff] %v2262_v20 }
 0x48e   :  { %v2264_v12 = vpop.eup %2263 }
 0x48f   :  { %v2266_v4 = vpop.eup %2265  ;;  %1716 = vst [vmem:[%s2965_s10 + $0xf0] sm:$0xff] %v2264_v12 }
 0x490   :  { %v2268_v13 = vpop.eup %2267  ;;  %1714 = vst [vmem:[%s2965_s10 + $0xe0] sm:$0xff] %v2266_v4 }
 0x491   :  { %v2270_v54 = vpop.eup %2269  ;;  %1717 = vst [vmem:[%s2965_s10 + $0xf8] sm:$0xff] %v2268_v13 }
 0x492   :  { %1715 = vst [vmem:[%s2965_s10 + $0xe8] sm:$0xff] %v2270_v54 }

</bundles_post_ra>
